<compile_context>
chip_gen: v5e
topology: v5e:2x2
jax: 0.10.0
libtpu: 0.0.40
codegen_flags: <defaults>
</compile_context>

<pallas_src>
import functools

import jax
import jax.numpy as jnp
from jax.experimental import pallas as pl
from jax.experimental.pallas import tpu as pltpu


def _cdiv(a, b):
    return (a + b - 1) // b


def _round_up(a, b):
    return _cdiv(a, b) * b


def _coord_channels(x_dim, y_dim, z_dim, dtype=jnp.float32):
    """(3, X, Y, Z) normalized coordinate channels, exactly as AddCoords builds them.

    Guarded against dim == 1 (the literal PyTorch code divides by dim-1 -> inf/nan).
    """
    cx = 2.0 * jnp.arange(x_dim, dtype=dtype) / max(x_dim - 1, 1) - 1.0
    cy = 2.0 * jnp.arange(y_dim, dtype=dtype) / max(y_dim - 1, 1) - 1.0
    cz = 2.0 * jnp.arange(z_dim, dtype=dtype) / max(z_dim - 1, 1) - 1.0
    xx = jnp.broadcast_to(cx[:, None, None], (x_dim, y_dim, z_dim))
    yy = jnp.broadcast_to(cy[None, :, None], (x_dim, y_dim, z_dim))
    zz = jnp.broadcast_to(cz[None, None, :], (x_dim, y_dim, z_dim))
    return jnp.stack([xx, yy, zz], axis=0)


def _choose_tile(s, batch, max_tile):
    """Largest lane-dense (multiple-of-128) spatial tile up to max_tile, while keeping
    at least 2 total grid steps so v7x megacore can split work across both cores."""
    s128 = _round_up(s, 128)
    tile = max(128, min(s128, _round_up(max_tile, 128)))
    while batch * _cdiv(s128, tile) < 2 and tile > 128:
        tile = max(128, _round_up(tile // 2, 128))
    return tile


def _vmem_limit_bytes(cin, cout, tile_m, streamed_coords):
    """Scoped-VMEM request derived from the actual working set (double-buffered input
    and output blocks + weight + in-kernel f32 temporaries), with 2x slack."""
    per_step = (max(cin, 1) + cout + (3 if streamed_coords else 0)) * tile_m
    scratch = (cout + 8) * tile_m + 2 * cout * (cin + 3)
    need = 4 * (2 * per_step + scratch)
    return int(min(max(2 * need, 8 << 20), 96 << 20))


def _exact_divmod_f32(n, d):
    """Exact (floor-div, mod) of a non-negative integer-valued f32 vector by a positive
    Python-int constant.  Valid while n < 2**23 (guarded by the wrapper).  Uses only
    ops guaranteed to lower on the VPU: fdiv, fptosi/sitofp, mul, sub, cmp, select."""
    df = jnp.float32(d)
    q = (n / df).astype(jnp.int32).astype(jnp.float32)   # trunc == floor for n >= 0
    r = n - q * df
    hi = r >= df                                          # off-by-one fix (q too small)
    q = jnp.where(hi, q + 1.0, q)
    r = jnp.where(hi, r - df, r)
    lo = r < 0.0                                          # off-by-one fix (q too large)
    q = jnp.where(lo, q - 1.0, q)
    r = jnp.where(lo, r + df, r)
    return q, r


def coordconv_kernel(*refs, cin, tile_m, x_dim, y_dim, z_dim, streamed_coords):
    """One (Cout, TM) output tile (channels-first, flattened spatial on the lane axis).

    refs (streamed_coords=False): [x_ref (Cin, TM) if cin>0,] w_ref (Cout, Cin+3), o_ref (Cout, TM)
    refs (streamed_coords=True) : [x_ref,] c_ref (3, TM), w_ref, o_ref
    """
    refs = list(refs)
    x_ref = refs.pop(0) if cin > 0 else None
    c_ref = refs.pop(0) if streamed_coords else None
    w_ref, o_ref = refs

    w = w_ref[...]
    if cin > 0:
        acc = jnp.dot(w[:, :cin], x_ref[...], preferred_element_type=jnp.float32)
    else:
        acc = jnp.zeros(o_ref.shape, jnp.float32)

    if streamed_coords:
        acc = acc + jnp.dot(w[:, cin:], c_ref[...], preferred_element_type=jnp.float32)
    else:
        # Build coordinate channels for this spatial tile from an iota — no HBM stream.
        j = pl.program_id(0)
        lane = jax.lax.broadcasted_iota(jnp.int32, (1, tile_m), 1)
        idx = (lane + j * tile_m).astype(jnp.float32)      # global flattened voxel index
        q, zi = _exact_divmod_f32(idx, z_dim)              # z = idx % Z
        xi, yi = _exact_divmod_f32(q, y_dim)               # y = (idx // Z) % Y ; x = idx // (Y*Z)
        cx = xi * (2.0 / max(x_dim - 1, 1)) - 1.0
        cy = yi * (2.0 / max(y_dim - 1, 1)) - 1.0
        cz = zi * (2.0 / max(z_dim - 1, 1)) - 1.0
        acc = (acc
               + w[:, cin + 0:cin + 1] * cx
               + w[:, cin + 1:cin + 2] * cy
               + w[:, cin + 2:cin + 3] * cz)

    o_ref[...] = acc.astype(o_ref.dtype)


def coordconv_forward(x, conv_w, *, max_tile=32768, out_dtype=None):
    """CoordConv forward (kernel_size=1, stride=1, padding=0, groups=1, bias=False).

    x: (B, Cin, X, Y, Z) float32, NCDHW like PyTorch.  conv_w: (Cout, Cin + 3).
    out_dtype: defaults to x.dtype; jnp.bfloat16 halves output write traffic if the
    consumer tolerates it (MXU accumulation stays f32 either way).
    """
    b, cin, x_dim, y_dim, z_dim = x.shape
    cout, ctot = conv_w.shape
    assert ctot == cin + 3, "conv weight must have in_channels + 3 input channels"
    out_dtype = x.dtype if out_dtype is None else jnp.dtype(out_dtype)

    s = x_dim * y_dim * z_dim
    tile_m = _choose_tile(s, b, max_tile)
    s_pad = _round_up(s, tile_m)          # pad instead of full-extent / tiny-divisor tiles
    num_tiles = s_pad // tile_m

    # In-kernel iota coords are exact while flattened indices fit comfortably in f32;
    # for larger volumes stream a precomputed (3, S) plane (batch-invariant, fetched once).
    streamed_coords = s_pad >= (1 << 23)

    args = []
    in_specs = []
    if cin > 0:
        x_flat = x.reshape(b, cin, s)                       # pure reshape, no transpose
        if s_pad != s:
            x_flat = jnp.pad(x_flat, ((0, 0), (0, 0), (0, s_pad - s)))
        args.append(x_flat)
        in_specs.append(pl.BlockSpec((None, cin, tile_m), lambda j, i: (i, 0, j)))
    if streamed_coords:
        coords = _coord_channels(x_dim, y_dim, z_dim).reshape(3, s)
        if s_pad != s:
            coords = jnp.pad(coords, ((0, 0), (0, s_pad - s)))
        args.append(coords)
        in_specs.append(pl.BlockSpec((3, tile_m), lambda j, i: (0, j)))
    args.append(conv_w)
    in_specs.append(pl.BlockSpec((cout, cin + 3), lambda j, i: (0, 0)))

    kernel = functools.partial(
        coordconv_kernel, cin=cin, tile_m=tile_m,
        x_dim=x_dim, y_dim=y_dim, z_dim=z_dim, streamed_coords=streamed_coords)

    out_flat = pl.pallas_call(
        kernel,
        out_shape=jax.ShapeDtypeStruct((b, cout, s_pad), out_dtype),
        grid_spec=pltpu.PrefetchScalarGridSpec(
            num_scalar_prefetch=0,
            grid=(num_tiles, b),          # batch innermost -> weight/coords blocks reused
            in_specs=in_specs,
            out_specs=pl.BlockSpec((None, cout, tile_m), lambda j, i: (i, 0, j)),
        ),
        compiler_params=pltpu.CompilerParams(
            dimension_semantics=("parallel", "parallel"),
            vmem_limit_bytes=_vmem_limit_bytes(cin, cout, tile_m, streamed_coords),
        ),
    )(*args)

    out = out_flat if s_pad == s else out_flat[:, :, :s]
    return out.reshape(b, cout, x_dim, y_dim, z_dim)


def coordconv_reference(x, conv_w):
    """Pure-JAX reference: Conv3d(1x1x1, no bias) over concat([x, coords], channel dim)."""
    b, cin, x_dim, y_dim, z_dim = x.shape
    cout = conv_w.shape[0]
    coords = _coord_channels(x_dim, y_dim, z_dim)
    w_in, w_c = conv_w[:, :cin], conv_w[:, cin:]
    coord_part = jnp.einsum('cxyz,oc->oxyz', coords, w_c)
    out = jnp.broadcast_to(coord_part[None], (b, cout, x_dim, y_dim, z_dim))
    if cin > 0:
        out = out + jnp.einsum('bixyz,oi->boxyz', x, w_in)
    return out


if __name__ == "__main__":
    # Small shapes consistent with the module: in_channels=4, out_channels=8,
    # kernel_size=1 (default), spatial 16x16x16, batch=2.
    B, Cin, Cout, X, Y, Z = 2, 4, 8, 16, 16, 16

    key = jax.random.PRNGKey(0)
    k_x, k_w = jax.random.split(key)
    x = jax.random.normal(k_x, (B, Cin, X, Y, Z), jnp.float32)
    # 1x1x1 Conv3d weight (out_channels, in_channels + 3); bias=False (module default).
    conv_w = jax.random.normal(k_w, (Cout, Cin + 3), jnp.float32) * 0.1

    out = coordconv_forward(x, conv_w)
    out = jax.block_until_ready(out)

    ref = coordconv_reference(x, conv_w)
    assert out.shape == (B, Cout, X, Y, Z)
    assert jnp.allclose(out, ref, rtol=1e-4, atol=1e-4), "mismatch vs reference"

    print("KERNEL_OK")
</pallas_src>

<mosaic_0001>
module attributes {stable_mosaic.version = 11 : i64} {
  func.func @coordconv_kernel(%arg0: i32, %arg1: i32, %arg2: memref<1x4x4096xf32, #tpu.memory_space<vmem>>, %arg3: memref<8x7xf32, #tpu.memory_space<vmem>>, %arg4: memref<1x8x4096xf32, #tpu.memory_space<vmem>>) attributes {dimension_semantics = [#tpu.dimension_semantics<parallel>, #tpu.dimension_semantics<parallel>], iteration_bounds = array<i64: 1, 2>, scalar_prefetch = 0 : i64, scratch_operands = 0 : i64, tpu.core_type = #tpu.core_type<tc>, window_params = [{transform_indices = @transform_0, window_bounds = array<i64: 1, 4, 4096>}, {pipeline_mode = #tpu.pipeline_mode<synchronous>, transform_indices = @transform_1, window_bounds = array<i64: 8, 7>}, {transform_indices = @transform_2, window_bounds = array<i64: 1, 8, 4096>}]} {
    %c0 = arith.constant 0 : index
    %c0_0 = arith.constant 0 : index
    %0 = vector.load %arg3[%c0, %c0_0] : memref<8x7xf32, #tpu.memory_space<vmem>>, vector<8x7xf32>
    %1 = vector.extract_strided_slice %0 {offsets = [0, 0], sizes = [8, 4], strides = [1, 1]} : vector<8x7xf32> to vector<8x4xf32>
    %c0_1 = arith.constant 0 : index
    %c0_2 = arith.constant 0 : index
    %c0_3 = arith.constant 0 : index
    %2 = vector.load %arg2[%c0_1, %c0_2, %c0_3] : memref<1x4x4096xf32, #tpu.memory_space<vmem>>, vector<1x4x4096xf32>
    %3 = vector.shape_cast %2 : vector<1x4x4096xf32> to vector<4x4096xf32>
    %cst = arith.constant dense<0.000000e+00> : vector<8x4096xf32>
    %4 = tpu.matmul %1, %3, %cst {dimension_numbers = #tpu.dot_dimension_numbers<[1], [0], [0], [1], [0, 0, 1, 1], [], []>} : vector<8x4xf32>, vector<4x4096xf32>, vector<8x4096xf32> -> vector<8x4096xf32>
    %5 = tpu.iota {dimensions = array<i32: 1>} : vector<1x4096xi32>
    %c4096_i32 = arith.constant 4096 : i32
    %6 = arith.muli %arg0, %c4096_i32 : i32
    %7 = vector.broadcast %6 : i32 to vector<1x4096xi32>
    %8 = arith.addi %5, %7 : vector<1x4096xi32>
    %9 = arith.sitofp %8 : vector<1x4096xi32> to vector<1x4096xf32>
    %cst_4 = arith.constant 1.600000e+01 : f32
    %10 = vector.broadcast %cst_4 : f32 to vector<1x4096xf32>
    %11 = arith.divf %9, %10 : vector<1x4096xf32>
    %12 = arith.fptosi %11 : vector<1x4096xf32> to vector<1x4096xi32>
    %13 = arith.sitofp %12 : vector<1x4096xi32> to vector<1x4096xf32>
    %cst_5 = arith.constant 1.600000e+01 : f32
    %14 = vector.broadcast %cst_5 : f32 to vector<1x4096xf32>
    %15 = arith.mulf %13, %14 : vector<1x4096xf32>
    %16 = arith.subf %9, %15 : vector<1x4096xf32>
    %cst_6 = arith.constant 1.600000e+01 : f32
    %17 = vector.broadcast %cst_6 : f32 to vector<1x4096xf32>
    %18 = arith.cmpf oge, %16, %17 : vector<1x4096xf32>
    %cst_7 = arith.constant 1.000000e+00 : f32
    %19 = vector.broadcast %cst_7 : f32 to vector<1x4096xf32>
    %20 = arith.addf %13, %19 : vector<1x4096xf32>
    %21 = arith.select %18, %20, %13 : vector<1x4096xi1>, vector<1x4096xf32>
    %cst_8 = arith.constant 1.600000e+01 : f32
    %22 = vector.broadcast %cst_8 : f32 to vector<1x4096xf32>
    %23 = arith.subf %16, %22 : vector<1x4096xf32>
    %24 = arith.select %18, %23, %16 : vector<1x4096xi1>, vector<1x4096xf32>
    %cst_9 = arith.constant 0.000000e+00 : f32
    %25 = vector.broadcast %cst_9 : f32 to vector<1x4096xf32>
    %26 = arith.cmpf olt, %24, %25 : vector<1x4096xf32>
    %cst_10 = arith.constant 1.000000e+00 : f32
    %27 = vector.broadcast %cst_10 : f32 to vector<1x4096xf32>
    %28 = arith.subf %21, %27 : vector<1x4096xf32>
    %29 = arith.select %26, %28, %21 : vector<1x4096xi1>, vector<1x4096xf32>
    %cst_11 = arith.constant 1.600000e+01 : f32
    %30 = vector.broadcast %cst_11 : f32 to vector<1x4096xf32>
    %31 = arith.addf %24, %30 : vector<1x4096xf32>
    %32 = arith.select %26, %31, %24 : vector<1x4096xi1>, vector<1x4096xf32>
    %cst_12 = arith.constant 1.600000e+01 : f32
    %33 = vector.broadcast %cst_12 : f32 to vector<1x4096xf32>
    %34 = arith.divf %29, %33 : vector<1x4096xf32>
    %35 = arith.fptosi %34 : vector<1x4096xf32> to vector<1x4096xi32>
    %36 = arith.sitofp %35 : vector<1x4096xi32> to vector<1x4096xf32>
    %cst_13 = arith.constant 1.600000e+01 : f32
    %37 = vector.broadcast %cst_13 : f32 to vector<1x4096xf32>
    %38 = arith.mulf %36, %37 : vector<1x4096xf32>
    %39 = arith.subf %29, %38 : vector<1x4096xf32>
    %cst_14 = arith.constant 1.600000e+01 : f32
    %40 = vector.broadcast %cst_14 : f32 to vector<1x4096xf32>
    %41 = arith.cmpf oge, %39, %40 : vector<1x4096xf32>
    %cst_15 = arith.constant 1.000000e+00 : f32
    %42 = vector.broadcast %cst_15 : f32 to vector<1x4096xf32>
    %43 = arith.addf %36, %42 : vector<1x4096xf32>
    %44 = arith.select %41, %43, %36 : vector<1x4096xi1>, vector<1x4096xf32>
    %cst_16 = arith.constant 1.600000e+01 : f32
    %45 = vector.broadcast %cst_16 : f32 to vector<1x4096xf32>
    %46 = arith.subf %39, %45 : vector<1x4096xf32>
    %47 = arith.select %41, %46, %39 : vector<1x4096xi1>, vector<1x4096xf32>
    %cst_17 = arith.constant 0.000000e+00 : f32
    %48 = vector.broadcast %cst_17 : f32 to vector<1x4096xf32>
    %49 = arith.cmpf olt, %47, %48 : vector<1x4096xf32>
    %cst_18 = arith.constant 1.000000e+00 : f32
    %50 = vector.broadcast %cst_18 : f32 to vector<1x4096xf32>
    %51 = arith.subf %44, %50 : vector<1x4096xf32>
    %52 = arith.select %49, %51, %44 : vector<1x4096xi1>, vector<1x4096xf32>
    %cst_19 = arith.constant 1.600000e+01 : f32
    %53 = vector.broadcast %cst_19 : f32 to vector<1x4096xf32>
    %54 = arith.addf %47, %53 : vector<1x4096xf32>
    %55 = arith.select %49, %54, %47 : vector<1x4096xi1>, vector<1x4096xf32>
    %cst_20 = arith.constant 0.13333334 : f32
    %56 = vector.broadcast %cst_20 : f32 to vector<1x4096xf32>
    %57 = arith.mulf %52, %56 : vector<1x4096xf32>
    %cst_21 = arith.constant 1.000000e+00 : f32
    %58 = vector.broadcast %cst_21 : f32 to vector<1x4096xf32>
    %59 = arith.subf %57, %58 : vector<1x4096xf32>
    %cst_22 = arith.constant 0.13333334 : f32
    %60 = vector.broadcast %cst_22 : f32 to vector<1x4096xf32>
    %61 = arith.mulf %55, %60 : vector<1x4096xf32>
    %cst_23 = arith.constant 1.000000e+00 : f32
    %62 = vector.broadcast %cst_23 : f32 to vector<1x4096xf32>
    %63 = arith.subf %61, %62 : vector<1x4096xf32>
    %cst_24 = arith.constant 0.13333334 : f32
    %64 = vector.broadcast %cst_24 : f32 to vector<1x4096xf32>
    %65 = arith.mulf %32, %64 : vector<1x4096xf32>
    %cst_25 = arith.constant 1.000000e+00 : f32
    %66 = vector.broadcast %cst_25 : f32 to vector<1x4096xf32>
    %67 = arith.subf %65, %66 : vector<1x4096xf32>
    %68 = vector.extract_strided_slice %0 {offsets = [0, 4], sizes = [8, 1], strides = [1, 1]} : vector<8x7xf32> to vector<8x1xf32>
    %69 = vector.broadcast %68 : vector<8x1xf32> to vector<8x4096xf32>
    %70 = vector.broadcast %59 : vector<1x4096xf32> to vector<8x4096xf32>
    %71 = arith.mulf %69, %70 : vector<8x4096xf32>
    %72 = arith.addf %4, %71 : vector<8x4096xf32>
    %73 = vector.extract_strided_slice %0 {offsets = [0, 5], sizes = [8, 1], strides = [1, 1]} : vector<8x7xf32> to vector<8x1xf32>
    %74 = vector.broadcast %73 : vector<8x1xf32> to vector<8x4096xf32>
    %75 = vector.broadcast %63 : vector<1x4096xf32> to vector<8x4096xf32>
    %76 = arith.mulf %74, %75 : vector<8x4096xf32>
    %77 = arith.addf %72, %76 : vector<8x4096xf32>
    %78 = vector.extract_strided_slice %0 {offsets = [0, 6], sizes = [8, 1], strides = [1, 1]} : vector<8x7xf32> to vector<8x1xf32>
    %79 = vector.broadcast %78 : vector<8x1xf32> to vector<8x4096xf32>
    %80 = vector.broadcast %67 : vector<1x4096xf32> to vector<8x4096xf32>
    %81 = arith.mulf %79, %80 : vector<8x4096xf32>
    %82 = arith.addf %77, %81 : vector<8x4096xf32>
    %c0_26 = arith.constant 0 : index
    %c0_27 = arith.constant 0 : index
    %c0_28 = arith.constant 0 : index
    %83 = vector.load %arg4[%c0_26, %c0_27, %c0_28] : memref<1x8x4096xf32, #tpu.memory_space<vmem>>, vector<1x8x4096xf32>
    %84 = vector.shape_cast %83 : vector<1x8x4096xf32> to vector<8x4096xf32>
    %85 = vector.shape_cast %82 : vector<8x4096xf32> to vector<1x8x4096xf32>
    tpu.vector_store %arg4[%c0_26, %c0_27, %c0_28], %85 {strides = array<i32>} : memref<1x8x4096xf32, #tpu.memory_space<vmem>>, vector<1x8x4096xf32>,
    return
  }
  func.func @transform_0(%arg0: i32, %arg1: i32) -> (i32, i32, i32) {
    %c0_i32 = arith.constant 0 : i32
    %c0_i32_0 = arith.constant 0 : i32
    return %arg1, %c0_i32, %arg0 : i32, i32, i32
  }
  func.func @transform_1(%arg0: i32, %arg1: i32) -> (i32, i32) {
    %c0_i32 = arith.constant 0 : i32
    %c0_i32_0 = arith.constant 0 : i32
    %c0_i32_1 = arith.constant 0 : i32
    return %c0_i32, %c0_i32_0 : i32, i32
  }
  func.func @transform_2(%arg0: i32, %arg1: i32) -> (i32, i32, i32) {
    %c0_i32 = arith.constant 0 : i32
    %c0_i32_0 = arith.constant 0 : i32
    return %arg1, %c0_i32, %arg0 : i32, i32, i32
  }
}

</mosaic_0001>

<bundles_post_ra>
// kernel: tpu_custom_call.1
= control target key start
LH: loop header
LB: loop body
LE: loop exit
PB: predicated region body
PF: predicated region fallthrough
CT: control target
= control target key end

     0   :  { %7 = vsyncpa [#allocation3], 0  ;;  %s4309_s0 = inlined_call_operand.hbm [shape: f32[2,4,4096], index: 0, kind: input, shape index: {}]   ;;  %s4310_s1 = inlined_call_operand.hbm [shape: f32[8,7], index: 1, kind: input, shape index: {}]   ;;  %s4311_s2 = inlined_call_operand.hbm [shape: f32[2,8,4096], index: 2, kind: output, shape index: {}]  }
   0x1   :  { %9 = vsyncpa [#allocation3 + $0x1], 0 }
   0x2   :  { %10 = vsyncpa [#allocation6], 0 }
   0x3   :  { %11 = vsyncpa [#allocation4], 0 }
   0x4   :  { %13 = vsyncpa [#allocation4 + $0x1], 0  ;;  %s3443_s9 = smov 0   ;;  %s3445_s10 = smov 0  }
   0x5   :  { %s3447_s11 = smov 0   ;;  %s3449_s12 = smov 0  }
   0x6   :  { %s3451_s13 = smov 0   ;;  %s3453_s14 = smov 0  }
   0x7 LB: > { %s2565_s15 = sadd.s32 4294967295, %s3421_s14   ;;  %s2566_s16 = sadd.s32 4294967294, %s3421_s14   ;;  %s3421_s14 = sphi %s3453_s14, %s19_s14   ;;  %s3417_s13 = sphi %s3451_s13, %s4323_s13   ;;  %s3413_s12 = sphi %s3449_s12, %s4322_s12   ;;  %s3409_s11 = sphi %s3447_s11, %s4321_s11   ;;  %s3405_s10 = sphi %s3445_s10, %s4320_s10   ;;  %s3401_s9 = sphi %s3443_s9, %s4319_s9  }
   0x8   : > { %p53_p0 = scmp.ne.s32.totalorder %s3405_s10, %s3401_s9  ;;  %p3477_p1 = scmp.eq.s32.totalorder %s2565_s15, 0 }
   0x9   : > { %p3481_p2 = scmp.eq.s32.totalorder %s2565_s15, 1  ;;  %p106_p3 = scmp.eq.s32.totalorder %s2566_s16, 1 }
   0xa   : > { %p3487_p4 = por %p3477_p1, %p53_p0  ;;  %p2567_p5 = scmp.ge.s32.totalorder %s3421_s14, 1 }
   0xb   : > { %p3492_p6 = por %p106_p3, %p53_p0  ;;  %p113_p7 = scmp.lt.s32.totalorder %s3421_s14, 3 }
   0xc   : > { %s125_s23 = sshll.u32 %s4310_s1, 4  ;;  %p2569_p9 = scmp.ge.s32.totalorder %s3421_s14, 2  ;;  %s126_s23 = int_to_ptr.hbm [resolvable:$true] %s125_s23 }
   0xd   : > { %p3500_p8 = pnand %p2567_p5, %p113_p7  ;;  %s3423_s25 = smov [#allocation5]  }
   0xe   : > { %s127_s26 = sshll.u32 %s3423_s25, 4  ;;  %s28_s27 = sadd.s32 1, %s3417_s13  ;;  %s128_s26 = int_to_ptr.vmem [resolvable:$true] %s127_s26 }
   0xf   : > { %p3200_p10 = pneg %p3500_p8  ;;  %p29_p12 = scmp.ge.s32.totalorder %s28_s27, 2 }
  0x10   : > { %s40_s28 = sadd.s32 1, %s3409_s11  ;;  %p47_p13 = scmp.ne.s32.totalorder %s3409_s11, %s3405_s10 }
  0x11   : > { %p3201_p11 = pnand %p3200_p10, %p3477_p1  ;;  %p48_p0 = scmp.eq.s32.totalorder %s3421_s14, 0 }
  0x12   : > { %s4325_s27 = smov (%p29_p12, %s28_s27), 0  ;;  %p3522_p5 = por %p3481_p2, %p47_p13 }
  0x13   : > { %3203 = dma.hbm_to_vmem [thread:$0]  (!%p3201_p11), %s126_s23, 128, %s128_s26, [#allocation6]  }
  0x14   : > { %p3516_p3 = por %p48_p0, %p47_p13  ;;  %s35_s3 = ssub.s32 %s3417_s13, %s4325_s27 }
  0x15   : > { %p3213_p7 = scmp.lt.s32.totalorder %s3421_s14, 2  ;;  %p38_p10 = scmp.eq.s32.totalorder %s35_s3, 0 }
  0x16   : > { %s138_s4 = sand.u32 1, %s3409_s11   ;;  %s2870_s7 = sshll.u32 %s3417_s13, 7 }
  0x17   : > { %s2570_s5 = sshll.u32 %s138_s4, 7  ;;  %s149_s16 = scalar_lea.hbm %s4309_s0, %s2870_s7 }
  0x18   : > { %s3531_s6 = scalar_select %p38_p10, %s3409_s11, %s40_s28  }
  0x19   : > { %s142_s21 = scalar_lea.vmem [#allocation2], %s2570_s5  ;;  %s151_s18 = sshll.u32 %s149_s16, 4  ;;  %s152_s18 = int_to_ptr.hbm [resolvable:$true] %s151_s18 }
  0x1a   : > { %s153_s22 = sshll.u32 %s142_s21, 4  ;;  %p3205_p2 = pnand %p3213_p7, %p3516_p3  ;;  %s154_s22 = int_to_ptr.vmem [resolvable:$true] %s153_s22 }
  0x1b   : > { %s139_s23 = scalar_lea.sflag [#allocation3], %s138_s4  ;;  %162 = sbr.rel (%p3500_p8) target bundleno = 540 (0x21c), region = 28 }
  0x1c   : > { %3207 = dma.hbm_to_vmem [thread:$0]  (!%p3205_p2), %s152_s18, 2048, %s154_s22, %s139_s23  }
  0x1d   : > { %s3542_s25 = sand.u32 (!%p3500_p8), 1, %s3405_s10  }
  0x1e   : > { %s2574_s26 = sshll.u32 (!%p3500_p8), %s3542_s25, 7  ;;  %s165_s28 = scalar_lea.sflag (!%p3500_p8), [#allocation3], %s3542_s25 }
  0x1f   : > { %s3546_s3 = scalar_lea.vmem (!%p3500_p8), [#allocation2], %s2574_s26 }
  0x20   : > { %3388 = dma.done.wait (%p3487_p4), %s165_s28, 2048  }
  0x21   : > { %3390 = vsyncadd (%p3487_p4), %s165_s28, 4294965248 }
  0x22   : > { %3392 = dma.done.wait (%p3477_p1), [#allocation6], 128  }
  0x23   : > { %3394 = vsyncadd (%p3477_p1), [#allocation6], 4294967168  ;;  %v3424_v0 = vmov 4   ;;  %v3425_v1 = vmov 6   ;;  %v198_v2 = vld [vmem:[%s3546_s3] sm:$0xff]  ;;  %v199_v3 = vld [vmem:[%s3546_s3 + $0x8] sm:$0xff]  ;;  %v214_v55 = vlaneseq }
  0x24   : > { %3269 = vset.pattern.permute.xlu0 %v3424_v0  ;;  %3271 = vset.pattern.permute.xlu1 %v3425_v1  ;;  %1525 = vst [vmem:[#allocation1] ss:$2 sm:$0xff] %v198_v2  ;;  %v3559_v4 = vld [vmem:[#allocation5] sm:$0xff]  ;;  %v201_v5 = vld [vmem:[%s3546_s3 + $0x18] sm:$0xff]  ;;  %v200_v6 = vld [vmem:[%s3546_s3 + $0x10] sm:$0xff]  ;;  %vm1579_vm0 = vcmask 1043456  }
  0x25   : > { %1527 = vst [vmem:[#allocation1 + $0x10] ss:$2 sm:$0xff] %v199_v3  ;;  %1474 = vperm.xlu0 %3269, %v3559_v4   ;;  %2353 = vperm.xlu1 %3271, %v3559_v4   ;;  %v202_v7 = vld [vmem:[%s3546_s3 + $0x20] sm:$0xff]  ;;  %v203_v8 = vld [vmem:[%s3546_s3 + $0x28] sm:$0xff]  ;;  %vm1576_vm1 = vcmask 31744   ;;  %v205_v12 = vld [vmem:[%s3546_s3 + $0x38] sm:$0xff] }
  0x26   : > { %1531 = vst [vmem:[#allocation1 + $0x30] ss:$2 sm:$0xff] %v201_v5  ;;  %v204_v16 = vld [vmem:[%s3546_s3 + $0x30] sm:$0xff]  ;;  %v206_v19 = vld [vmem:[%s3546_s3 + $0x40] sm:$0xff]  ;;  %v207_v20 = vld [vmem:[%s3546_s3 + $0x48] sm:$0xff]  ;;  %v3426_v21 = vmov 5  }
  0x27   : > { %1529 = vst [vmem:[#allocation1 + $0x20] ss:$2 sm:$0xff] %v200_v6  ;;  %v209_v24 = vld [vmem:[%s3546_s3 + $0x58] sm:$0xff]  ;;  %v208_v29 = vld [vmem:[%s3546_s3 + $0x50] sm:$0xff]  ;;  %v210_v32 = vld [vmem:[%s3546_s3 + $0x60] sm:$0xff]  ;;  %v3427_v52 = vmov 16.0  }
  0x28   : > { %v211_v33 = vld [vmem:[%s3546_s3 + $0x68] sm:$0xff]  ;;  %v213_v36 = vld [vmem:[%s3546_s3 + $0x78] sm:$0xff]  ;;  %v212_v39 = vld [vmem:[%s3546_s3 + $0x70] sm:$0xff]  ;;  %3273 = vrcp.f32 %v3427_v52  ;;  %v3667_v57 = vand.u32 127, %v214_v55  ;;  %s2576_s17 = sshll.u32 %s3542_s25, 8  ;;  %s2871_s24 = sshll.u32 %s3413_s12, 8 }
  0x29   : > { %s3835_s19 = scalar_lea.vmem [#allocation7], %s2576_s17  ;;  %s2466_s5 = scalar_lea.hbm %s4311_s2, %s2871_s24 }
  0x2a   : > { %v216_v59 = vadd.s32 128, %v3667_v57  ;;  %v217_v60 = vadd.s32 256, %v3667_v57  ;;  %v218_v61 = vadd.s32 384, %v3667_v57  ;;  %v281_v63 = vcvt.s32.f32 %v3667_v57  ;;  %s2468_s7 = sshll.u32 %s3835_s19, 4  ;;  %s2470_s12 = sshll.u32 %s2466_s5, 4  ;;  %s2469_s7 = int_to_ptr.vmem [resolvable:$true] %s2468_s7  ;;  %s2471_s12 = int_to_ptr.hbm [resolvable:$true] %s2470_s12 }
  0x2b   : > { %v1532_v9 = vld.sshfl [vmem:[#allocation1] sm:$0xff pattern:$0x75316420]  ;;  %v1533_v10 = vld.sshfl [vmem:[#allocation1 + $0x8] sm:$0xff pattern:$0x75316420] }
  0x2c   : > { %2801 = vmatpush.msk.msra.mxu0 %vm1579_vm0, %v1532_v9  ;;  %1540 = vst [vmem:[#allocation1] ss:$2 sm:$0xff] %v202_v7  ;;  %2803 = vmatpush.msk.msra.mxu1 %vm1579_vm0, %v1533_v10  ;;  %v1534_v11 = vld.sshfl [vmem:[#allocation1 + $0x10] sm:$0xff pattern:$0x75316420]  ;;  %v282_v0 = vcvt.s32.f32 %v216_v59  ;;  %v284_v3 = vcvt.s32.f32 %v218_v61  ;;  %s2453_s8 = scalar_lea.sflag [#allocation4], %s3542_s25 }
  0x2d   : > { %2805 = vmatpush.msk.msra.mxu2 %vm1579_vm0, %v1534_v11  ;;  %v1535_v13 = vld.sshfl [vmem:[#allocation1 + $0x18] sm:$0xff pattern:$0x75316420]  ;;  %2802 = vmatmul.msk.f32.vlgmr.msra.gmra.mxu0 %vm1576_vm1, %v3559_v4  ;;  %v1538_v14 = vld.sshfl [vmem:[#allocation1 + $0x30] sm:$0xff pattern:$0x75316420] }
  0x2e   : > { %1541 = vst [vmem:[#allocation1 + $0x10] ss:$2 sm:$0xff] %v203_v8  ;;  %2807 = vmatpush.msk.msra.mxu3 %vm1579_vm0, %v1535_v13  ;;  %2804 = vmatmul.msk.f32.vlgmr.msra.gmra.mxu1 %vm1576_vm1, %v3559_v4  ;;  %v1539_v15 = vld.sshfl [vmem:[#allocation1 + $0x38] sm:$0xff pattern:$0x75316420]  ;;  %v3274_v53 = vpop.eup %3273  ;;  %s3349_s15 = sshra.s32 %s2471_s12, 4  ;;  %s3350_s15 = int_to_ptr.hbm [resolvable:$true] %s3349_s15 }
  0x2f   : > { %2806 = vmatmul.msk.f32.vlgmr.msra.gmra.mxu2 %vm1576_vm1, %v3559_v4  ;;  %2808 = vmatmul.msk.f32.vlgmr.msra.gmra.mxu3 %vm1576_vm1, %v3559_v4  ;;  %1543 = vst [vmem:[#allocation1 + $0x30] ss:$2 sm:$0xff] %v205_v12  ;;  %v1536_v17 = vld.sshfl [vmem:[#allocation1 + $0x20] sm:$0xff pattern:$0x75316420]  ;;  %v314_v54 = vmul.f32 16.0, %v3274_v53  ;;  %vm318_vm2 = vweird.f32 %v3274_v53  ;;  %p3356_p11 = scmp.lt.s32.totalorder %s3350_s15, %s4311_s2 }
  0x30   : > { %2813 = vmatpush.msk.msrb.mxu2 %vm1579_vm0, %v1538_v14  ;;  %2815 = vmatpush.msk.msrb.mxu3 %vm1579_vm0, %v1539_v15  ;;  %v1537_v18 = vld.sshfl [vmem:[#allocation1 + $0x28] sm:$0xff pattern:$0x75316420]  ;;  %s3351_s16 = scalar_lea.hbm %s3350_s15, 256  ;;  %s3355_s18 = scalar_lea.hbm %s4311_s2, 512 }
  0x31   : > { %2809 = vmatpush.msk.msrb.mxu0 %vm1579_vm0, %v1536_v17  ;;  %1542 = vst [vmem:[#allocation1 + $0x20] ss:$2 sm:$0xff] %v204_v16  ;;  %2811 = vmatpush.msk.msrb.mxu1 %vm1579_vm0, %v1537_v18  ;;  %v315_v56 = vsub.f32 1.0, %v314_v54  ;;  %p3352_p1 = scmp.ne.s32.totalorder %s3350_s15, %s3351_s16  ;;  %p3357_p12 = scmp.lt.s32.totalorder %s3355_s18, %s3351_s16 }
  0x32   : > { %3270 = vset.pattern.permute.xlu0 %v3426_v21  ;;  %v3688_v21 = vadd.s32 512, %v3667_v57 }
  0x33   : > { %v1544_v22 = vld.sshfl [vmem:[#allocation1] sm:$0xff pattern:$0x75316420]  ;;  %v1545_v23 = vld.sshfl [vmem:[#allocation1 + $0x8] sm:$0xff pattern:$0x75316420]  ;;  %2285 = vperm.xlu0 %3270, %v3559_v4   ;;  %v316_v58 = vmul.f32 %v3274_v53, %v315_v56  ;;  %p3353_p4 = pnand %p3352_p1, %p3522_p5  ;;  %p3358_p13 = por %p3357_p12, %p3356_p11 }
  0x34   : > { %2817 = vmatpush.msk.msra.mxu0 %vm1579_vm0, %v1544_v22  ;;  %1552 = vst [vmem:[#allocation1] ss:$2 sm:$0xff] %v206_v19  ;;  %2819 = vmatpush.msk.msra.mxu1 %vm1579_vm0, %v1545_v23  ;;  %v3691_v22 = vadd.s32 640, %v3667_v57 }
  0x35   : > { %2810 = vmatmul.msk.f32.vlgmr.msrb.gmra.mxu0 %vm1576_vm1, %v3559_v4  ;;  %v1546_v25 = vld.sshfl [vmem:[#allocation1 + $0x10] sm:$0xff pattern:$0x75316420]  ;;  %v1547_v26 = vld.sshfl [vmem:[#allocation1 + $0x18] sm:$0xff pattern:$0x75316420]  ;;  %v317_v62 = vadd.f32 %v3274_v53, %v316_v58  ;;  %p3354_p8 = pneg %p3353_p4 }
  0x36   : > { %2812 = vmatmul.msk.f32.vlgmr.msrb.gmra.mxu1 %vm1576_vm1, %v3559_v4  ;;  %2821 = vmatpush.msk.msra.mxu2 %vm1579_vm0, %v1546_v25  ;;  %1553 = vst [vmem:[#allocation1 + $0x10] ss:$2 sm:$0xff] %v207_v20  ;;  %v1550_v27 = vld.sshfl [vmem:[#allocation1 + $0x30] sm:$0xff pattern:$0x75316420] }
  0x37   : > { %2814 = vmatmul.msk.f32.vlgmr.msrb.gmra.mxu2 %vm1576_vm1, %v3559_v4  ;;  %2816 = vmatmul.msk.f32.vlgmr.msrb.gmra.mxu3 %vm1576_vm1, %v3559_v4  ;;  %v1551_v28 = vld.sshfl [vmem:[#allocation1 + $0x38] sm:$0xff pattern:$0x75316420]  ;;  %v3681_v2 = vsel %vm318_vm2, %v3274_v53, %v317_v62  ;;  %p3359_p0 = pnand %p3358_p13, %p3354_p8 }
  0x38   : > { %2823 = vmatpush.msk.msra.mxu3 %vm1579_vm0, %v1547_v26  ;;  %2829 = vmatpush.msk.msrb.mxu2 %vm1579_vm0, %v1550_v27  ;;  %1555 = vst [vmem:[#allocation1 + $0x30] ss:$2 sm:$0xff] %v209_v24  ;;  %v1548_v30 = vld.sshfl [vmem:[#allocation1 + $0x20] sm:$0xff pattern:$0x75316420]  ;;  %v320_v5 = vmul.f32 %v3681_v2, %v281_v63  ;;  %v321_v6 = vmul.f32 %v3681_v2, %v282_v0 }
  0x39   : > { %2825 = vmatpush.msk.msrb.mxu0 %vm1579_vm0, %v1548_v30  ;;  %v1549_v31 = vld.sshfl [vmem:[#allocation1 + $0x28] sm:$0xff pattern:$0x75316420]  ;;  %v323_v8 = vmul.f32 %v3681_v2, %v284_v3 }
  0x3a   : > { %2831 = vmatpush.msk.msrb.mxu3 %vm1579_vm0, %v1551_v28  ;;  %1554 = vst [vmem:[#allocation1 + $0x20] ss:$2 sm:$0xff] %v208_v29  ;;  %2827 = vmatpush.msk.msrb.mxu1 %vm1579_vm0, %v1549_v31  ;;  %v2873_v9 = vceil.f32 %v320_v5  ;;  %v2874_v10 = vfloor.f32 %v320_v5  ;;  %v2878_v11 = vceil.f32 %v321_v6  ;;  %vm2872_vm3 = vcmp.lt.s32.totalorder %v320_v5, 0 }
  0x3b   : > { %v1556_v34 = vld.sshfl [vmem:[#allocation1] sm:$0xff pattern:$0x75316420]  ;;  %v1557_v35 = vld.sshfl [vmem:[#allocation1 + $0x8] sm:$0xff pattern:$0x75316420]  ;;  %3272 = vset.pattern.permute.xlu0 %v3425_v1  ;;  %v283_v1 = vcvt.s32.f32 %v217_v60  ;;  %v2888_v18 = vceil.f32 %v323_v8  ;;  %v2889_v19 = vfloor.f32 %v323_v8  ;;  %v285_v28 = vcvt.s32.f32 %v3688_v21 }
  0x3c   : > { %1564 = vst [vmem:[#allocation1] ss:$2 sm:$0xff] %v210_v32  ;;  %vm2877_vm4 = vcmp.lt.s32.totalorder %v321_v6, 0  ;;  %v2875_v13 = vsel %vm2872_vm3, %v2873_v9, %v2874_v10  ;;  %vm2887_vm6 = vcmp.lt.s32.totalorder %v323_v8, 0 }
  0x3d   : > { %2818 = vmatmul.msk.f32.vlgmr.msra.gmra.mxu0 %vm1576_vm1, %v3559_v4  ;;  %v1558_v37 = vld.sshfl [vmem:[#allocation1 + $0x10] sm:$0xff pattern:$0x75316420]  ;;  %v1559_v38 = vld.sshfl [vmem:[#allocation1 + $0x18] sm:$0xff pattern:$0x75316420]  ;;  %v322_v7 = vmul.f32 %v3681_v2, %v283_v1  ;;  %v2876_v16 = vcvt.f32.s32 %v2875_v13  ;;  %v2890_v26 = vsel %vm2887_vm6, %v2888_v18, %v2889_v19 }
  0x3e   : > { %2820 = vmatmul.msk.f32.vlgmr.msra.gmra.mxu1 %vm1576_vm1, %v3559_v4  ;;  %1565 = vst [vmem:[#allocation1 + $0x10] ss:$2 sm:$0xff] %v211_v33  ;;  %2833 = vmatpush.msk.msra.mxu0 %vm1579_vm0, %v1556_v34  ;;  %v2891_v27 = vcvt.f32.s32 %v2890_v26  ;;  %v286_v33 = vcvt.s32.f32 %v3691_v22 }
  0x3f   : > { %2822 = vmatmul.msk.f32.vlgmr.msra.gmra.mxu2 %vm1576_vm1, %v3559_v4  ;;  %2824 = vmatmul.msk.f32.vlgmr.msra.gmra.mxu3 %vm1576_vm1, %v3559_v4  ;;  %v1562_v40 = vld.sshfl [vmem:[#allocation1 + $0x30] sm:$0xff pattern:$0x75316420]  ;;  %v1563_v41 = vld.sshfl [vmem:[#allocation1 + $0x38] sm:$0xff pattern:$0x75316420]  ;;  %v2883_v12 = vceil.f32 %v322_v7  ;;  %v2884_v15 = vfloor.f32 %v322_v7  ;;  %v384_v23 = vcvt.s32.f32 %v2876_v16 }
  0x40   : > { %2837 = vmatpush.msk.msra.mxu2 %vm1579_vm0, %v1558_v37  ;;  %2839 = vmatpush.msk.msra.mxu3 %vm1579_vm0, %v1559_v38  ;;  %1567 = vst [vmem:[#allocation1 + $0x30] ss:$2 sm:$0xff] %v213_v36  ;;  %vm2882_vm5 = vcmp.lt.s32.totalorder %v322_v7, 0  ;;  %v387_v32 = vcvt.s32.f32 %v2891_v27  ;;  %v3698_v37 = vmul.f32 %v3681_v2, %v285_v28 }
  0x41   : > { %2835 = vmatpush.msk.msra.mxu1 %vm1579_vm0, %v1557_v35  ;;  %v1560_v42 = vld.sshfl [vmem:[#allocation1 + $0x20] sm:$0xff pattern:$0x75316420]  ;;  %v1561_v43 = vld.sshfl [vmem:[#allocation1 + $0x28] sm:$0xff pattern:$0x75316420]  ;;  %v2885_v20 = vsel %vm2882_vm5, %v2883_v12, %v2884_v15 }
  0x42   : > { %1566 = vst [vmem:[#allocation1 + $0x20] ss:$2 sm:$0xff] %v212_v39  ;;  %v2886_v25 = vcvt.f32.s32 %v2885_v20  ;;  %v416_v29 = vmul.f32 16.0, %v384_v23  ;;  %v512_v38 = vadd.f32 1.0, %v384_v23 }
  0x43   : > { %v1568_v44 = vld.sshfl [vmem:[#allocation1] sm:$0xff pattern:$0x75316420]  ;;  %v1569_v47 = vld.sshfl [vmem:[#allocation1 + $0x8] sm:$0xff pattern:$0x75316420] }
  0x44   : > { %v386_v31 = vcvt.s32.f32 %v2886_v25  ;;  %v448_v34 = vsub.f32 %v281_v63, %v416_v29  ;;  %v515_v63 = vadd.f32 1.0, %v387_v32 }
  0x45   : > { %2826 = vmatmul.msk.f32.vlgmr.msrb.gmra.mxu0 %vm1576_vm1, %v3559_v4  ;;  %v1570_v45 = vld.sshfl [vmem:[#allocation1 + $0x10] sm:$0xff pattern:$0x75316420]  ;;  %v1571_v46 = vld.sshfl [vmem:[#allocation1 + $0x18] sm:$0xff pattern:$0x75316420] }
  0x46   : > { %2828 = vmatmul.msk.f32.vlgmr.msrb.gmra.mxu1 %vm1576_vm1, %v3559_v4  ;;  %2841 = vmatpush.msk.msrb.mxu0 %vm1579_vm0, %v1560_v42  ;;  %v418_v36 = vmul.f32 16.0, %v386_v31  ;;  %vm480_vm7 = vcmp.ge.f32.partialorder %v448_v34, 16.0  ;;  %v2577_v42 = vadd.f32 -16.0, %v448_v34 }
  0x47   : > { %2830 = vmatmul.msk.f32.vlgmr.msrb.gmra.mxu2 %vm1576_vm1, %v3559_v4  ;;  %2832 = vmatmul.msk.f32.vlgmr.msrb.gmra.mxu3 %vm1576_vm1, %v3559_v4  ;;  %v1574_v49 = vld.sshfl [vmem:[#allocation1 + $0x30] sm:$0xff pattern:$0x75316420]  ;;  %v1575_v50 = vld.sshfl [vmem:[#allocation1 + $0x38] sm:$0xff pattern:$0x75316420] }
  0x48   : > { %2845 = vmatpush.msk.msrb.mxu2 %vm1579_vm0, %v1562_v40  ;;  %2847 = vmatpush.msk.msrb.mxu3 %vm1579_vm0, %v1563_v41  ;;  %v514_v40 = vadd.f32 1.0, %v386_v31  ;;  %v419_v41 = vmul.f32 16.0, %v387_v32 }
  0x49   : > { %2843 = vmatpush.msk.msrb.mxu1 %vm1579_vm0, %v1561_v43  ;;  %v1572_v48 = vld.sshfl [vmem:[#allocation1 + $0x20] sm:$0xff pattern:$0x75316420]  ;;  %v1573_v51 = vld.sshfl [vmem:[#allocation1 + $0x28] sm:$0xff pattern:$0x75316420] }
  0x4d   : > { %2834 = vmatmul.msk.f32.vlgmr.msra.gmra.mxu0 %vm1576_vm1, %v3559_v4 }
  0x4e   : > { %2836 = vmatmul.msk.f32.vlgmr.msra.gmra.mxu1 %vm1576_vm1, %v3559_v4  ;;  %2849 = vmatpush.msk.msra.mxu0 %vm1579_vm0, %v1568_v44  ;;  %v544_v44 = vsel %vm480_vm7, %v512_v38, %v384_v23 }
  0x4f   : > { %2838 = vmatmul.msk.f32.vlgmr.msra.gmra.mxu2 %vm1576_vm1, %v3559_v4  ;;  %2840 = vmatmul.msk.f32.vlgmr.msra.gmra.mxu3 %vm1576_vm1, %v3559_v4 }
  0x50   : > { %2853 = vmatpush.msk.msra.mxu2 %vm1579_vm0, %v1570_v45  ;;  %2855 = vmatpush.msk.msra.mxu3 %vm1579_vm0, %v1571_v46  ;;  %v450_v46 = vsub.f32 %v283_v1, %v418_v36 }
  0x51   : > { %2851 = vmatpush.msk.msra.mxu1 %vm1579_vm0, %v1569_v47  ;;  %v451_v47 = vsub.f32 %v284_v3, %v419_v41 }
  0x52   : > { %vm482_vm11 = vcmp.ge.f32.partialorder %v450_v46, 16.0  ;;  %v2579_v56 = vadd.f32 -16.0, %v450_v46 }
  0x53   : > { %v546_v55 = vsel %vm482_vm11, %v514_v40, %v386_v31  ;;  %vm483_vm12 = vcmp.ge.f32.partialorder %v451_v47, 16.0 }
  0x54   : > { %v2611_v61 = vadd.f32 -1.0, %v546_v55  ;;  %v3707_v62 = vsel %vm482_vm11, %v2579_v56, %v450_v46  ;;  %v547_v10 = vsel %vm483_vm12, %v515_v63, %v387_v32 }
  0x55   : > { %2842 = vmatmul.msk.f32.vlgmr.msrb.gmra.mxu0 %vm1576_vm1, %v3559_v4  ;;  %vm642_vm15 = vcmp.lt.f32.partialorder %v3707_v62, 0.0 }
  0x56   : > { %2844 = vmatmul.msk.f32.vlgmr.msrb.gmra.mxu1 %vm1576_vm1, %v3559_v4  ;;  %2857 = vmatpush.msk.msrb.mxu0 %vm1579_vm0, %v1572_v48  ;;  %v608_v48 = vsel %vm480_vm7, %v2577_v42, %v448_v34  ;;  %v706_v9 = vsel %vm642_vm15, %v2611_v61, %v546_v55 }
  0x57   : > { %2846 = vmatmul.msk.f32.vlgmr.msrb.gmra.mxu2 %vm1576_vm1, %v3559_v4  ;;  %2848 = vmatmul.msk.f32.vlgmr.msrb.gmra.mxu3 %vm1576_vm1, %v3559_v4  ;;  %vm640_vm9 = vcmp.lt.f32.partialorder %v608_v48, 0.0  ;;  %v736_v52 = vadd.f32 16.0, %v608_v48  ;;  %v802_v13 = vmul.f32 %v706_v9, %v3681_v2 }
  0x58   : > { %2861 = vmatpush.msk.msrb.mxu2 %vm1579_vm0, %v1574_v49  ;;  %2863 = vmatpush.msk.msrb.mxu3 %vm1579_vm0, %v1575_v50  ;;  %v2609_v49 = vadd.f32 -1.0, %v544_v44 }
  0x59   : > { %2859 = vmatpush.msk.msrb.mxu1 %vm1579_vm0, %v1573_v51  ;;  %v768_v58 = vsel %vm640_vm9, %v736_v52, %v608_v48  ;;  %vm2892_vm0 = vcmp.lt.s32.totalorder %v3698_v37, 0  ;;  %v3043_v19 = vceil.f32 %v802_v13  ;;  %v3044_v20 = vfloor.f32 %v802_v13 }
  0x5a   : > { %v704_v53 = vsel %vm640_vm9, %v2609_v49, %v544_v44 }
  0x5b   : > { %v800_v59 = vmul.f32 %v704_v53, %v3681_v2 }
  0x5d   : > { %2850 = vmatmul.msk.f32.vlgmr.msra.gmra.mxu0 %vm1576_vm1, %v3559_v4  ;;  %vm3032_vm13 = vcmp.lt.s32.totalorder %v800_v59, 0  ;;  %v3033_v1 = vceil.f32 %v800_v59  ;;  %v3034_v3 = vfloor.f32 %v800_v59 }
  0x5e   : > { %2852 = vmatmul.msk.f32.vlgmr.msra.gmra.mxu1 %vm1576_vm1, %v3559_v4 }
  0x5f   : > { %2854 = vmatmul.msk.f32.vlgmr.msra.gmra.mxu2 %vm1576_vm1, %v3559_v4  ;;  %2856 = vmatmul.msk.f32.vlgmr.msra.gmra.mxu3 %vm1576_vm1, %v3559_v4  ;;  %v3035_v8 = vsel %vm3032_vm13, %v3033_v1, %v3034_v3 }
  0x65   : > { %2858 = vmatmul.msk.f32.vlgmr.msrb.gmra.mxu0 %vm1576_vm1, %v3559_v4 }
  0x66   : > { %2860 = vmatmul.msk.f32.vlgmr.msrb.gmra.mxu1 %vm1576_vm1, %v3559_v4 }
  0x67   : > { %2862 = vmatmul.msk.f32.vlgmr.msrb.gmra.mxu2 %vm1576_vm1, %v3559_v4  ;;  %2864 = vmatmul.msk.f32.vlgmr.msrb.gmra.mxu3 %vm1576_vm1, %v3559_v4  ;;  %v2879_v4 = vfloor.f32 %v321_v6  ;;  %v1408_v6 = vmul.f32 0.13333334, %v768_v58  ;;  %vm3042_vm1 = vcmp.lt.s32.totalorder %v802_v13, 0 }
  0x68   : > { %v3045_v27 = vsel %vm3042_vm1, %v3043_v19, %v3044_v20 }
  0x69   : > { %v2880_v14 = vsel %vm2877_vm4, %v2878_v11, %v2879_v4  ;;  %v2580_v11 = vadd.f32 -16.0, %v451_v47  ;;  %v3036_v4 = vcvt.f32.s32 %v3035_v8  ;;  %v3046_v31 = vcvt.f32.s32 %v3045_v27 }
  0x6a   : > { %v2881_v17 = vcvt.f32.s32 %v2880_v14  ;;  %v2612_v14 = vadd.f32 -1.0, %v547_v10  ;;  %v3734_v36 = vadd.f32 -1.0, %v1408_v6 }
  0x6b   : > { %v3720_v16 = vsel %vm483_vm12, %v2580_v11, %v451_v47  ;;  %v864_v18 = vcvt.s32.f32 %v3036_v4  ;;  %v866_v42 = vcvt.s32.f32 %v3046_v31  ;;  %v738_v11 = vadd.f32 16.0, %v3707_v62 }
  0x6c   : > { %v385_v24 = vcvt.s32.f32 %v2881_v17  ;;  %v2893_v17 = vceil.f32 %v3698_v37  ;;  %vm643_vm2 = vcmp.lt.f32.partialorder %v3720_v16, 0.0 }
  0x6d   : > { %v896_v25 = vmul.f32 16.0, %v864_v18  ;;  %v992_v26 = vadd.f32 1.0, %v864_v18  ;;  %v3728_v29 = vsel %vm643_vm2, %v2612_v14, %v547_v10  ;;  %v994_v52 = vadd.f32 1.0, %v866_v42 }
  0x6e   : > { %v417_v30 = vmul.f32 16.0, %v385_v24  ;;  %v513_v39 = vadd.f32 1.0, %v385_v24  ;;  %v803_v32 = vmul.f32 %v3728_v29, %v3681_v2 }
  0x70   : > { %v449_v35 = vsub.f32 %v282_v0, %v417_v30  ;;  %v3712_v0 = vmul.f32 %v3681_v2, %v286_v33  ;;  %vm3047_vm4 = vcmp.lt.s32.totalorder %v803_v32, 0  ;;  %v3049_v4 = vfloor.f32 %v803_v32 }
  0x72   : > { %vm481_vm8 = vcmp.ge.f32.partialorder %v449_v35, 16.0  ;;  %v2578_v43 = vadd.f32 -16.0, %v449_v35  ;;  %vm2897_vm7 = vcmp.lt.s32.totalorder %v3712_v0, 0 }
  0x73   : > { %v545_v45 = vsel %vm481_vm8, %v513_v39, %v385_v24  ;;  %v2894_v24 = vfloor.f32 %v3698_v37  ;;  %v2898_v39 = vceil.f32 %v3712_v0  ;;  %v898_v37 = vmul.f32 16.0, %v866_v42 }
  0x74   : > { %v3700_v50 = vsel %vm481_vm8, %v2578_v43, %v449_v35  ;;  %v2610_v51 = vadd.f32 -1.0, %v545_v45  ;;  %v928_v35 = vsub.f32 %v704_v53, %v896_v25  ;;  %v2899_v43 = vfloor.f32 %v3712_v0 }
  0x75   : > { %vm641_vm10 = vcmp.lt.f32.partialorder %v3700_v50, 0.0  ;;  %v2895_v34 = vsel %vm2892_vm0, %v2893_v17, %v2894_v24  ;;  %v930_v1 = vsub.f32 %v706_v9, %v898_v37 }
  0x76   : > { %v705_v54 = vsel %vm641_vm10, %v2610_v51, %v545_v45  ;;  %v2896_v38 = vcvt.f32.s32 %v2895_v34  ;;  %vm960_vm3 = vcmp.ge.f32.partialorder %v928_v35, 16.0  ;;  %v2641_v44 = vadd.f32 -16.0, %v928_v35 }
  0x77   : > { %v801_v60 = vmul.f32 %v705_v54, %v3681_v2  ;;  %v3048_v45 = vceil.f32 %v803_v32  ;;  %v1024_v46 = vsel %vm960_vm3, %v992_v26, %v864_v18  ;;  %vm962_vm9 = vcmp.ge.f32.partialorder %v930_v1, 16.0 }
  0x78   : > { %v1088_v48 = vsel %vm960_vm3, %v2641_v44, %v928_v35  ;;  %v2673_v49 = vadd.f32 -1.0, %v1024_v46  ;;  %v2643_v14 = vadd.f32 -16.0, %v930_v1  ;;  %v1026_v9 = vsel %vm962_vm9, %v994_v52, %v866_v42 }
  0x79   : > { %v3038_v5 = vceil.f32 %v801_v60  ;;  %vm3037_vm14 = vcmp.lt.s32.totalorder %v801_v60, 0  ;;  %v3039_v7 = vfloor.f32 %v801_v60  ;;  %vm1120_vm6 = vcmp.lt.f32.partialorder %v1088_v48, 0.0 }
  0x7a   : > { %v1216_v53 = vadd.f32 16.0, %v1088_v48  ;;  %v1184_v56 = vsel %vm1120_vm6, %v2673_v49, %v1024_v46  ;;  %v1090_v18 = vsel %vm962_vm9, %v2643_v14, %v930_v1  ;;  %v2675_v19 = vadd.f32 -1.0, %v1026_v9 }
  0x7b   : > { %v3040_v12 = vsel %vm3037_vm14, %v3038_v5, %v3039_v7  ;;  %v1280_v61 = vmul.f32 0.13333334, %v1184_v56  ;;  %v1218_v24 = vadd.f32 16.0, %v1090_v18  ;;  %v3050_v25 = vsel %vm3047_vm4, %v3048_v45, %v3049_v4 }
  0x7c   : > { %v3041_v15 = vcvt.f32.s32 %v3040_v12  ;;  %v1248_v60 = vsel %vm1120_vm6, %v1216_v53, %v1088_v48  ;;  %v388_v26 = vcvt.s32.f32 %v2896_v38  ;;  %v3051_v34 = vcvt.f32.s32 %v3050_v25 }
  0x7d   : > { %v1344_v3 = vmul.f32 0.13333334, %v1248_v60  ;;  %v2705_v8 = vadd.f32 -1.0, %v1280_v61  ;;  %v2900_v32 = vsel %vm2897_vm7, %v2898_v39, %v2899_v43 }
  0x7e   : > { %v865_v23 = vcvt.s32.f32 %v3041_v15  ;;  %v867_v44 = vcvt.s32.f32 %v3051_v34  ;;  %v516_v46 = vadd.f32 1.0, %v388_v26  ;;  %v2901_v48 = vcvt.f32.s32 %v2900_v32 }
  0x7f   : > { %v3744_v12 = vadd.f32 -1.0, %v1344_v3 }
  0x80   : > { %v897_v30 = vmul.f32 16.0, %v865_v23  ;;  %v993_v41 = vadd.f32 1.0, %v865_v23  ;;  %v899_v53 = vmul.f32 16.0, %v867_v44  ;;  %v995_v43 = vadd.f32 1.0, %v867_v44 }
  0x81   : > { %v389_v60 = vcvt.s32.f32 %v2901_v48 }
  0x82   : > { %v929_v40 = vsub.f32 %v705_v54, %v897_v30  ;;  %v737_v54 = vadd.f32 16.0, %v3700_v50  ;;  %v931_v21 = vsub.f32 %v3728_v29, %v899_v53 }
  0x83   : > { %v421_v3 = vmul.f32 16.0, %v389_v60 }
  0x84   : > { %vm961_vm5 = vcmp.ge.f32.partialorder %v929_v40, 16.0  ;;  %v2642_v47 = vadd.f32 -16.0, %v929_v40  ;;  %v769_v63 = vsel %vm641_vm10, %v737_v54, %v3700_v50  ;;  %v770_v50 = vsel %vm642_vm15, %v738_v11, %v3707_v62 }
  0x85   : > { %v1025_v51 = vsel %vm961_vm5, %v993_v41, %v865_v23  ;;  %v1409_v7 = vmul.f32 0.13333334, %v769_v63  ;;  %v1410_v20 = vmul.f32 0.13333334, %v770_v50  ;;  %v739_v23 = vadd.f32 16.0, %v3720_v16 }
  0x86   : > { %v1089_v55 = vsel %vm961_vm5, %v2642_v47, %v929_v40  ;;  %v2674_v58 = vadd.f32 -1.0, %v1025_v51  ;;  %vm1122_vm10 = vcmp.lt.f32.partialorder %v1090_v18, 0.0  ;;  %v420_v41 = vmul.f32 16.0, %v388_v26 }
  0x87   : > { %vm1121_vm8 = vcmp.lt.f32.partialorder %v1089_v55, 0.0  ;;  %v1217_v59 = vadd.f32 16.0, %v1089_v55  ;;  %v2770_v17 = vadd.f32 -1.0, %v1409_v7  ;;  %v1186_v27 = vsel %vm1122_vm10, %v2675_v19, %v1026_v9 }
  0x88   : > { %v1185_v5 = vsel %vm1121_vm8, %v2674_v58, %v1025_v51  ;;  %v2771_v30 = vadd.f32 -1.0, %v1410_v20  ;;  %v771_v31 = vsel %vm643_vm2, %v739_v23, %v3720_v16  ;;  %v1250_v35 = vsel %vm1122_vm10, %v1218_v24, %v1090_v18 }
  0x89   : > { %v1249_v6 = vsel %vm1121_vm8, %v1217_v59, %v1089_v55  ;;  %v1281_v10 = vmul.f32 0.13333334, %v1185_v5  ;;  %v1282_v62 = vmul.f32 0.13333334, %v1186_v27  ;;  %v1411_v40 = vmul.f32 0.13333334, %v771_v31 }
  0x8a   : > { %v1345_v13 = vmul.f32 0.13333334, %v1249_v6  ;;  %v1346_v42 = vmul.f32 0.13333334, %v1250_v35  ;;  %v452_v16 = vsub.f32 %v285_v28, %v420_v41  ;;  %vm963_vm12 = vcmp.ge.f32.partialorder %v931_v21, 16.0 }
  0x8b   : > { %v2706_v15 = vadd.f32 -1.0, %v1281_v10  ;;  %v2707_v45 = vadd.f32 -1.0, %v1282_v62  ;;  %v2772_v47 = vadd.f32 -1.0, %v1411_v40  ;;  %v2644_v61 = vadd.f32 -16.0, %v931_v21 }
  0x8c   : > { %v2738_v51 = vadd.f32 -1.0, %v1345_v13  ;;  %v2739_v0 = vadd.f32 -1.0, %v1346_v42  ;;  %vm484_vm11 = vcmp.ge.f32.partialorder %v452_v16, 16.0  ;;  %v2581_v59 = vadd.f32 -16.0, %v452_v16 }
  0x8d   : > { %v548_v58 = vsel %vm484_vm11, %v516_v46, %v388_v26  ;;  %v1027_v29 = vsel %vm963_vm12, %v995_v43, %v867_v44  ;;  %v517_v5 = vadd.f32 1.0, %v389_v60  ;;  %v1091_v6 = vsel %vm963_vm12, %v2644_v61, %v931_v21 }
  0x8e   : > { %v2613_v63 = vadd.f32 -1.0, %v548_v58  ;;  %v612_v1 = vsel %vm484_vm11, %v2581_v59, %v452_v16  ;;  %v2676_v7 = vadd.f32 -1.0, %v1027_v29  ;;  %vm1123_vm14 = vcmp.lt.f32.partialorder %v1091_v6, 0.0 }
  0x8f   : > { %vm644_vm13 = vcmp.lt.f32.partialorder %v612_v1, 0.0  ;;  %v1219_v10 = vadd.f32 16.0, %v1091_v6  ;;  %v453_v4 = vsub.f32 %v286_v33, %v421_v3  ;;  %v3799_v31 = vadd.s32 896, %v3667_v57 }
  0x90   : > { %v708_v11 = vsel %vm644_vm13, %v2613_v63, %v548_v58  ;;  %v1187_v13 = vsel %vm1123_vm14, %v2676_v7, %v1027_v29 }
  0x91   : > { %v1251_v50 = vsel %vm1123_vm14, %v1219_v10, %v1091_v6  ;;  %v1283_v9 = vmul.f32 0.13333334, %v1187_v13  ;;  %vm485_vm15 = vcmp.ge.f32.partialorder %v453_v4, 16.0  ;;  %v2582_v22 = vadd.f32 -16.0, %v453_v4 }
  0x92   : > { %v1347_v19 = vmul.f32 0.13333334, %v1251_v50  ;;  %v549_v26 = vsel %vm485_vm15, %v517_v5, %v389_v60  ;;  %v288_v43 = vcvt.s32.f32 %v3799_v31  ;;  %v3829_v10 = vadd.s32 1024, %v3667_v57 }
  0x93   : > { %v2708_v24 = vadd.f32 -1.0, %v1283_v9  ;;  %v2614_v27 = vadd.f32 -1.0, %v549_v26  ;;  %v613_v41 = vsel %vm485_vm15, %v2582_v22, %v453_v4 }
  0x94   : > { %v2740_v35 = vadd.f32 -1.0, %v1347_v19  ;;  %vm645_vm1 = vcmp.lt.f32.partialorder %v613_v41, 0.0  ;;  %v327_v63 = vmul.f32 %v3681_v2, %v288_v43 }
  0x95   : > { %v3816_v16 = vsel %vm645_vm1, %v2614_v27, %v549_v26 }
  0x96   : > { %vm2907_vm5 = vcmp.lt.s32.totalorder %v327_v63, 0  ;;  %v2908_v26 = vceil.f32 %v327_v63  ;;  %v2909_v22 = vfloor.f32 %v327_v63 }
  0x97   : > { %v3758_v38 = vpop.permute.xlu0 %1474  ;;  %v3760_v37 = vpop.permute.xlu1 %2353 }
  0x98   : > { %v3765_v49 = vmul.f32 %v2705_v8, %v3758_v38  ;;  %v3768_v52 = vmul.f32 %v2706_v15, %v3758_v38  ;;  %v3771_v39 = vmul.f32 %v2707_v45, %v3758_v38  ;;  %v3775_v54 = vmul.f32 %v3734_v36, %v3760_v37 }
  0x99   : > { %v3779_v28 = vmul.f32 %v2770_v17, %v3760_v37  ;;  %v3782_v55 = vmul.f32 %v2771_v30, %v3760_v37  ;;  %v3785_v56 = vmul.f32 %v2772_v47, %v3760_v37  ;;  %v3788_v36 = vadd.s32 768, %v3667_v57 }
  0x9a   : > { %v740_v8 = vadd.f32 16.0, %v612_v1  ;;  %v804_v15 = vmul.f32 %v708_v11, %v3681_v2  ;;  %v3804_v62 = vmul.f32 %v2708_v24, %v3758_v38  ;;  %v741_v47 = vadd.f32 16.0, %v613_v41 }
  0x9b   : > { %v287_v17 = vcvt.s32.f32 %v3788_v36 }
  0x9c   : > { %v772_v14 = vsel %vm644_vm13, %v740_v8, %v612_v1  ;;  %vm3052_vm0 = vcmp.lt.s32.totalorder %v804_v15, 0  ;;  %v3053_v20 = vceil.f32 %v804_v15  ;;  %v3054_v23 = vfloor.f32 %v804_v15 }
  0x9d   : > { %v1412_v18 = vmul.f32 0.13333334, %v772_v14  ;;  %v326_v30 = vmul.f32 %v3681_v2, %v287_v17  ;;  %v773_v21 = vsel %vm645_vm1, %v741_v47, %v613_v41 }
  0x9e   : > { %v3055_v33 = vsel %vm3052_vm0, %v3053_v20, %v3054_v23  ;;  %v1413_v60 = vmul.f32 0.13333334, %v773_v21 }
  0x9f   : > { %v2773_v25 = vadd.f32 -1.0, %v1412_v18  ;;  %v3056_v40 = vcvt.f32.s32 %v3055_v33  ;;  %vm2902_vm2 = vcmp.lt.s32.totalorder %v326_v30, 0  ;;  %v2903_v48 = vceil.f32 %v326_v30 }
  0xa0   : > { %v2904_v53 = vfloor.f32 %v326_v30  ;;  %v3831_v14 = vadd.f32 -1.0, %v1413_v60 }
  0xa1   : > { %v3814_v32 = vmul.f32 %v2773_v25, %v3760_v37  ;;  %v868_v45 = vcvt.s32.f32 %v3056_v40 }
  0xa2   : > { %v2905_v61 = vsel %vm2902_vm2, %v2903_v48, %v2904_v53  ;;  %v2910_v53 = vsel %vm2907_vm5, %v2908_v26, %v2909_v22 }
  0xa3   : > { %v996_v59 = vadd.f32 1.0, %v868_v45  ;;  %v2906_v8 = vcvt.f32.s32 %v2905_v61 }
  0xa5   : > { %v3801_v34 = vpop.permute.xlu0 %2285  ;;  %v390_v23 = vcvt.s32.f32 %v2906_v8 }
  0xa6   : > { %v2288_v42 = vmul.f32 %v3744_v12, %v3801_v34  ;;  %v2289_v44 = vmul.f32 %v2738_v51, %v3801_v34  ;;  %v3811_v46 = vmul.f32 %v2739_v0, %v3801_v34  ;;  %v2291_v12 = vmul.f32 %v2740_v35, %v3801_v34 }
  0xa7   : > { %v900_v51 = vmul.f32 16.0, %v868_v45  ;;  %v805_v0 = vmul.f32 %v3816_v16, %v3681_v2  ;;  %v422_v35 = vmul.f32 16.0, %v390_v23  ;;  %v518_v40 = vadd.f32 1.0, %v390_v23 }
  0xa9   : > { %v932_v3 = vsub.f32 %v708_v11, %v900_v51  ;;  %vm3057_vm3 = vcmp.lt.s32.totalorder %v805_v0, 0  ;;  %v3058_v5 = vceil.f32 %v805_v0  ;;  %v3059_v7 = vfloor.f32 %v805_v0 }
  0xaa   : > { %v1661_v58 = vpop.f32.mrf.mxu0  ;;  %v454_v48 = vsub.f32 %v287_v17, %v422_v35 }
  0xab   : > { %v1662_v29 = vadd.f32 %v1661_v58, %v3765_v49  ;;  %v1681_v1 = vpop.f32.mrf.mxu1  ;;  %vm964_vm4 = vcmp.ge.f32.partialorder %v932_v3, 16.0  ;;  %v2645_v13 = vadd.f32 -16.0, %v932_v3  ;;  %v3060_v49 = vsel %vm3057_vm3, %v3058_v5, %v3059_v7 }
  0xac   : > { %v1682_v6 = vadd.f32 %v1681_v1, %v3768_v52  ;;  %v1028_v50 = vsel %vm964_vm4, %v996_v59, %v868_v45  ;;  %v3061_v19 = vcvt.f32.s32 %v3060_v49  ;;  %vm486_vm7 = vcmp.ge.f32.partialorder %v454_v48, 16.0 }
  0xad   : > { %v2320_v4 = vadd.f32 %v2288_v42, %v1662_v29  ;;  %v1092_v9 = vsel %vm964_vm4, %v2645_v13, %v932_v3  ;;  %v2677_v18 = vadd.f32 -1.0, %v1028_v50  ;;  %v2911_v59 = vcvt.f32.s32 %v2910_v53 }
  0xae   : > { %v2321_v15 = vadd.f32 %v2289_v44, %v1682_v6  ;;  %vm1124_vm6 = vcmp.lt.f32.partialorder %v1092_v9, 0.0  ;;  %v1220_v20 = vadd.f32 16.0, %v1092_v9  ;;  %v869_v25 = vcvt.s32.f32 %v3061_v19 }
  0xaf   : > { %v2388_v11 = vadd.f32 %v3775_v54, %v2320_v4  ;;  %v1188_v24 = vsel %vm1124_vm6, %v2677_v18, %v1028_v50  ;;  %v550_v29 = vsel %vm486_vm7, %v518_v40, %v390_v23  ;;  %v391_v5 = vcvt.s32.f32 %v2911_v59 }
  0xb0   : > { %v2389_v52 = vadd.f32 %v3779_v28, %v2321_v15  ;;  %v1252_v54 = vsel %vm1124_vm6, %v1220_v20, %v1092_v9  ;;  %v1284_v30 = vmul.f32 0.13333334, %v1188_v24  ;;  %v901_v44 = vmul.f32 16.0, %v869_v25 }
  0xb1   : > { %2420 = vst [vmem:[%s3835_s19] sm:$0xff] %v2388_v11  ;;  %v1348_v42 = vmul.f32 0.13333334, %v1252_v54  ;;  %v997_v47 = vadd.f32 1.0, %v869_v25  ;;  %v2615_v3 = vadd.f32 -1.0, %v550_v29  ;;  %v423_v4 = vmul.f32 16.0, %v391_v5 }
  0xb2   : > { %v1701_v33 = vpop.f32.mrf.mxu2  ;;  %v1721_v27 = vpop.f32.mrf.mxu3  ;;  %2421 = vst [vmem:[%s3835_s19 + $0x8] sm:$0xff] %v2389_v52  ;;  %v2709_v45 = vadd.f32 -1.0, %v1284_v30  ;;  %v933_v58 = vsub.f32 %v3816_v16, %v901_v44 }
  0xb3   : > { %v1702_v28 = vadd.f32 %v1701_v33, %v3771_v39  ;;  %v1722_v41 = vadd.f32 %v1721_v27, %v3804_v62  ;;  %v2741_v0 = vadd.f32 -1.0, %v1348_v42  ;;  %v2583_v62 = vadd.f32 -16.0, %v454_v48  ;;  %v1741_v17 = vpop.f32.mrf.mxu0  ;;  %v1761_v35 = vpop.f32.mrf.mxu1 }
  0xb4   : > { %v1481_v39 = vmul.f32 %v2709_v45, %v3758_v38  ;;  %vm965_vm8 = vcmp.ge.f32.partialorder %v933_v58, 16.0  ;;  %v2646_v63 = vadd.f32 -16.0, %v933_v58  ;;  %v455_v19 = vsub.f32 %v288_v43, %v423_v4 }
  0xb5   : > { %v2322_v51 = vadd.f32 %v3811_v46, %v1702_v28  ;;  %v2323_v21 = vadd.f32 %v2291_v12, %v1722_v41  ;;  %v2292_v61 = vmul.f32 %v2741_v0, %v3801_v34  ;;  %v1029_v12 = vsel %vm965_vm8, %v997_v47, %v869_v25 }
  0xb6   : > { %v1742_v46 = vadd.f32 %v1741_v17, %v1481_v39  ;;  %v2678_v16 = vadd.f32 -1.0, %v1029_v12  ;;  %v614_v1 = vsel %vm486_vm7, %v2583_v62, %v454_v48  ;;  %v1093_v7 = vsel %vm965_vm8, %v2646_v63, %v933_v58 }
  0xb7   : > { %v2390_v60 = vadd.f32 %v3782_v55, %v2322_v51  ;;  %v2391_v36 = vadd.f32 %v3785_v56, %v2323_v21  ;;  %vm646_vm9 = vcmp.lt.f32.partialorder %v614_v1, 0.0  ;;  %v742_v55 = vadd.f32 16.0, %v614_v1 }
  0xb8   : > { %v2324_v6 = vadd.f32 %v2292_v61, %v1742_v46  ;;  %vm1125_vm10 = vcmp.lt.f32.partialorder %v1093_v7, 0.0  ;;  %v1221_v56 = vadd.f32 16.0, %v1093_v7  ;;  %v710_v8 = vsel %vm646_vm9, %v2615_v3, %v550_v29 }
  0xb9   : > { %2422 = vst [vmem:[%s3835_s19 + $0x10] sm:$0xff] %v2390_v60  ;;  %v1189_v15 = vsel %vm1125_vm10, %v2678_v16, %v1029_v12  ;;  %v774_v50 = vsel %vm646_vm9, %v742_v55, %v614_v1  ;;  %v806_v49 = vmul.f32 %v710_v8, %v3681_v2  ;;  %v2361_v25 = vmul.f32 %v3831_v14, %v3760_v37 }
  0xba   : > { %2423 = vst [vmem:[%s3835_s19 + $0x18] sm:$0xff] %v2391_v36  ;;  %v2392_v13 = vadd.f32 %v3814_v32, %v2324_v6  ;;  %v1253_v11 = vsel %vm1125_vm10, %v1221_v56, %v1093_v7  ;;  %v1285_v9 = vmul.f32 0.13333334, %v1189_v15  ;;  %v1414_v18 = vmul.f32 0.13333334, %v774_v50 }
  0xbb   : > { %v1349_v52 = vmul.f32 0.13333334, %v1253_v11  ;;  %vm3062_vm11 = vcmp.lt.s32.totalorder %v806_v49, 0  ;;  %v3063_v20 = vceil.f32 %v806_v49  ;;  %v3064_v23 = vfloor.f32 %v806_v49 }
  0xbc   : > { %2424 = vst [vmem:[%s3835_s19 + $0x20] sm:$0xff] %v2392_v13  ;;  %v2710_v24 = vadd.f32 -1.0, %v1285_v9  ;;  %vm487_vm12 = vcmp.ge.f32.partialorder %v455_v19, 16.0  ;;  %v519_v32 = vadd.f32 1.0, %v391_v5  ;;  %v2584_v33 = vadd.f32 -16.0, %v455_v19 }
  0xbd   : > { %v2742_v26 = vadd.f32 -1.0, %v1349_v52  ;;  %v3065_v22 = vsel %vm3062_vm11, %v3063_v20, %v3064_v23  ;;  %v289_v27 = vcvt.s32.f32 %v3829_v10  ;;  %v2775_v43 = vadd.f32 -1.0, %v1414_v18 }
  0xbe   : > { %v1482_v54 = vmul.f32 %v2710_v24, %v3758_v38  ;;  %v3066_v31 = vcvt.f32.s32 %v3065_v22  ;;  %v551_v30 = vsel %vm487_vm12, %v519_v32, %v391_v5  ;;  %v615_v28 = vsel %vm487_vm12, %v2584_v33, %v455_v19 }
  0xbf   : > { %v2293_v40 = vmul.f32 %v2742_v26, %v3801_v34  ;;  %v2616_v41 = vadd.f32 -1.0, %v551_v30  ;;  %v328_v42 = vmul.f32 %v3681_v2, %v289_v27  ;;  %vm647_vm13 = vcmp.lt.f32.partialorder %v615_v28, 0.0 }
  0xc0   : > { %v1762_v14 = vadd.f32 %v1761_v35, %v1482_v54  ;;  %v870_v44 = vcvt.s32.f32 %v3066_v31  ;;  %v743_v45 = vadd.f32 16.0, %v615_v28  ;;  %v3865_v62 = vadd.s32 1152, %v3667_v57  ;;  %v1781_v54 = vpop.f32.mrf.mxu2 }
  0xc1   : > { %v711_v47 = vsel %vm647_vm13, %v2616_v41, %v551_v30  ;;  %vm2912_vm14 = vcmp.lt.s32.totalorder %v328_v42, 0  ;;  %v2913_v48 = vceil.f32 %v328_v42  ;;  %v2914_v10 = vfloor.f32 %v328_v42 }
  0xc2   : > { %v2325_v53 = vadd.f32 %v2293_v40, %v1762_v14  ;;  %v902_v51 = vmul.f32 16.0, %v870_v44  ;;  %v998_v21 = vadd.f32 1.0, %v870_v44  ;;  %v775_v0 = vsel %vm647_vm13, %v743_v45, %v615_v28 }
  0xc3   : > { %v807_v58 = vmul.f32 %v711_v47, %v3681_v2  ;;  %v2915_v39 = vsel %vm2912_vm14, %v2913_v48, %v2914_v10  ;;  %v3868_v17 = vadd.s32 1280, %v3667_v57  ;;  %v3871_v61 = vmul.f32 %v2775_v43, %v3760_v37 }
  0xc4   : > { %v2393_v59 = vadd.f32 %v2361_v25, %v2325_v53  ;;  %v934_v60 = vsub.f32 %v710_v8, %v902_v51  ;;  %v2916_v36 = vcvt.f32.s32 %v2915_v39  ;;  %v290_v16 = vcvt.s32.f32 %v3865_v62 }
  0xc5   : > { %vm3067_vm15 = vcmp.lt.s32.totalorder %v807_v58, 0  ;;  %v3068_v46 = vceil.f32 %v807_v58  ;;  %v3069_v12 = vfloor.f32 %v807_v58  ;;  %v1415_v5 = vmul.f32 0.13333334, %v775_v0 }
  0xc6   : > { %2425 = vst [vmem:[%s3835_s19 + $0x28] sm:$0xff] %v2393_v59  ;;  %vm966_vm0 = vcmp.ge.f32.partialorder %v934_v60, 16.0  ;;  %v2647_v63 = vadd.f32 -16.0, %v934_v60  ;;  %v392_v29 = vcvt.s32.f32 %v2916_v36  ;;  %v291_v6 = vcvt.s32.f32 %v3868_v17 }
  0xc7   : > { %v1030_v1 = vsel %vm966_vm0, %v998_v21, %v870_v44  ;;  %v3070_v3 = vsel %vm3067_vm15, %v3068_v46, %v3069_v12  ;;  %v329_v15 = vmul.f32 %v3681_v2, %v290_v16 }
  0xc8   : > { %v1094_v7 = vsel %vm966_vm0, %v2647_v63, %v934_v60  ;;  %v2679_v55 = vadd.f32 -1.0, %v1030_v1  ;;  %v3071_v56 = vcvt.f32.s32 %v3070_v3  ;;  %v424_v8 = vmul.f32 16.0, %v392_v29 }
  0xc9   : > { %vm1126_vm1 = vcmp.lt.f32.partialorder %v1094_v7, 0.0  ;;  %v1222_v4 = vadd.f32 16.0, %v1094_v7  ;;  %v520_v13 = vadd.f32 1.0, %v392_v29  ;;  %v330_v9 = vmul.f32 %v3681_v2, %v291_v6 }
  0xca   : > { %v1190_v50 = vsel %vm1126_vm1, %v2679_v55, %v1030_v1  ;;  %v871_v49 = vcvt.s32.f32 %v3071_v56  ;;  %v456_v11 = vsub.f32 %v289_v27, %v424_v8  ;;  %vm2917_vm2 = vcmp.lt.s32.totalorder %v329_v15, 0 }
  0xcb   : > { %v1254_v18 = vsel %vm1126_vm1, %v1222_v4, %v1094_v7  ;;  %v1286_v19 = vmul.f32 0.13333334, %v1190_v50  ;;  %v2918_v52 = vceil.f32 %v329_v15  ;;  %v2919_v22 = vfloor.f32 %v329_v15  ;;  %v1801_v4 = vpop.f32.mrf.mxu3 }
  0xcc   : > { %v1350_v20 = vmul.f32 0.13333334, %v1254_v18  ;;  %v903_v23 = vmul.f32 16.0, %v871_v49  ;;  %v999_v24 = vadd.f32 1.0, %v871_v49  ;;  %vm488_vm3 = vcmp.ge.f32.partialorder %v456_v11, 16.0 }
  0xcd   : > { %v2711_v25 = vadd.f32 -1.0, %v1286_v19  ;;  %v552_v32 = vsel %vm488_vm3, %v520_v13, %v392_v29  ;;  %v2585_v26 = vadd.f32 -16.0, %v456_v11  ;;  %v2776_v27 = vadd.f32 -1.0, %v1415_v5 }
  0xce   : > { %v2743_v33 = vadd.f32 -1.0, %v1350_v20  ;;  %v935_v31 = vsub.f32 %v711_v47, %v903_v23  ;;  %v2617_v43 = vadd.f32 -1.0, %v552_v32  ;;  %v2920_v40 = vsel %vm2917_vm2, %v2918_v52, %v2919_v22 }
  0xcf   : > { %v1483_v30 = vmul.f32 %v2711_v25, %v3758_v38  ;;  %v616_v35 = vsel %vm488_vm3, %v2585_v26, %v456_v11  ;;  %v2923_v28 = vceil.f32 %v330_v9  ;;  %v2921_v51 = vcvt.f32.s32 %v2920_v40 }
  0xd0   : > { %v2294_v41 = vmul.f32 %v2743_v33, %v3801_v34  ;;  %vm967_vm4 = vcmp.ge.f32.partialorder %v935_v31, 16.0  ;;  %v2648_v42 = vadd.f32 -16.0, %v935_v31  ;;  %vm648_vm5 = vcmp.lt.f32.partialorder %v616_v35, 0.0 }
  0xd1   : > { %v1782_v14 = vadd.f32 %v1781_v54, %v1483_v30  ;;  %v1031_v44 = vsel %vm967_vm4, %v999_v24, %v871_v49  ;;  %v712_v45 = vsel %vm648_vm5, %v2617_v43, %v552_v32  ;;  %v744_v48 = vadd.f32 16.0, %v616_v35 }
  0xd2   : > { %v1095_v10 = vsel %vm967_vm4, %v2648_v42, %v935_v31  ;;  %v2680_v53 = vadd.f32 -1.0, %v1031_v44  ;;  %v808_v47 = vmul.f32 %v712_v45, %v3681_v2  ;;  %vm2922_vm8 = vcmp.lt.s32.totalorder %v330_v9, 0 }
  0xd3   : > { %v2326_v21 = vadd.f32 %v2294_v41, %v1782_v14  ;;  %vm1127_vm6 = vcmp.lt.f32.partialorder %v1095_v10, 0.0  ;;  %v1223_v0 = vadd.f32 16.0, %v1095_v10  ;;  %v776_v58 = vsel %vm648_vm5, %v744_v48, %v616_v35 }
  0xd4   : > { %v1191_v39 = vsel %vm1127_vm6, %v2680_v53, %v1031_v44  ;;  %vm3072_vm7 = vcmp.lt.s32.totalorder %v808_v47, 0  ;;  %v3073_v59 = vceil.f32 %v808_v47  ;;  %v3074_v60 = vfloor.f32 %v808_v47 }
  0xd5   : > { %v2394_v36 = vadd.f32 %v3871_v61, %v2326_v21  ;;  %v1255_v46 = vsel %vm1127_vm6, %v1223_v0, %v1095_v10  ;;  %v1287_v12 = vmul.f32 0.13333334, %v1191_v39  ;;  %v393_v1 = vcvt.s32.f32 %v2921_v51 }
  0xd6   : > { %v1351_v63 = vmul.f32 0.13333334, %v1255_v46  ;;  %v3075_v29 = vsel %vm3072_vm7, %v3073_v59, %v3074_v60  ;;  %v2924_v3 = vfloor.f32 %v330_v9  ;;  %v1416_v55 = vmul.f32 0.13333334, %v776_v58 }
  0xd7   : > { %2426 = vst [vmem:[%s3835_s19 + $0x30] sm:$0xff] %v2394_v36  ;;  %v2712_v5 = vadd.f32 -1.0, %v1287_v12  ;;  %v3076_v7 = vcvt.f32.s32 %v3075_v29  ;;  %v3889_v56 = vadd.s32 1408, %v3667_v57  ;;  %v2363_v13 = vmul.f32 %v2776_v27, %v3760_v37 }
  0xd8   : > { %v2744_v8 = vadd.f32 -1.0, %v1351_v63  ;;  %v425_v15 = vmul.f32 16.0, %v393_v1  ;;  %v2925_v61 = vsel %vm2922_vm8, %v2923_v28, %v2924_v3  ;;  %v521_v11 = vadd.f32 1.0, %v393_v1 }
  0xd9   : > { %v1484_v50 = vmul.f32 %v2712_v5, %v3758_v38  ;;  %v872_v49 = vcvt.s32.f32 %v3076_v7  ;;  %v2926_v18 = vcvt.f32.s32 %v2925_v61  ;;  %v292_v52 = vcvt.s32.f32 %v3889_v56 }
  0xda   : > { %v2295_v9 = vmul.f32 %v2744_v8, %v3801_v34  ;;  %v457_v19 = vsub.f32 %v290_v16, %v425_v15  ;;  %v3898_v20 = vadd.s32 1536, %v3667_v57  ;;  %v2777_v25 = vadd.f32 -1.0, %v1416_v55  ;;  %v1821_v15 = vpop.f32.mrf.mxu0 }
  0xdb   : > { %v1802_v23 = vadd.f32 %v1801_v4, %v1484_v50  ;;  %v904_v24 = vmul.f32 16.0, %v872_v49  ;;  %v394_v32 = vcvt.s32.f32 %v2926_v18  ;;  %v1000_v26 = vadd.f32 1.0, %v872_v49 }
  0xdc   : > { %vm489_vm9 = vcmp.ge.f32.partialorder %v457_v19, 16.0  ;;  %v2586_v22 = vadd.f32 -16.0, %v457_v19  ;;  %v331_v33 = vmul.f32 %v3681_v2, %v292_v52  ;;  %v293_v35 = vcvt.s32.f32 %v3898_v20 }
  0xdd   : > { %v2327_v54 = vadd.f32 %v2295_v9, %v1802_v23  ;;  %v936_v62 = vsub.f32 %v712_v45, %v904_v24  ;;  %v553_v16 = vsel %vm489_vm9, %v521_v11, %v393_v1  ;;  %v426_v31 = vmul.f32 16.0, %v394_v32 }
  0xde   : > { %v617_v27 = vsel %vm489_vm9, %v2586_v22, %v457_v19  ;;  %v2618_v43 = vadd.f32 -1.0, %v553_v16  ;;  %v522_v30 = vadd.f32 1.0, %v394_v32  ;;  %v2928_v53 = vceil.f32 %v331_v33 }
  0xdf   : > { %v2395_v40 = vadd.f32 %v2363_v13, %v2327_v54  ;;  %vm968_vm10 = vcmp.ge.f32.partialorder %v936_v62, 16.0  ;;  %v2649_v28 = vadd.f32 -16.0, %v936_v62  ;;  %vm649_vm11 = vcmp.lt.f32.partialorder %v617_v27, 0.0 }
  0xe0   : > { %v1032_v41 = vsel %vm968_vm10, %v1000_v26, %v872_v49  ;;  %v713_v42 = vsel %vm649_vm11, %v2618_v43, %v553_v16  ;;  %v745_v14 = vadd.f32 16.0, %v617_v27  ;;  %v458_v44 = vsub.f32 %v291_v6, %v426_v31 }
  0xe1   : > { %2427 = vst [vmem:[%s3835_s19 + $0x38] sm:$0xff] %v2395_v40  ;;  %v1096_v48 = vsel %vm968_vm10, %v2649_v28, %v936_v62  ;;  %v2681_v45 = vadd.f32 -1.0, %v1032_v41  ;;  %v809_v10 = vmul.f32 %v713_v42, %v3681_v2  ;;  %vm2927_vm15 = vcmp.lt.s32.totalorder %v331_v33, 0 }
  0xe2   : > { %vm1128_vm12 = vcmp.lt.f32.partialorder %v1096_v48, 0.0  ;;  %v1224_v47 = vadd.f32 16.0, %v1096_v48  ;;  %v777_v51 = vsel %vm649_vm11, %v745_v14, %v617_v27  ;;  %vm490_vm13 = vcmp.ge.f32.partialorder %v458_v44, 16.0 }
  0xe3   : > { %v1192_v21 = vsel %vm1128_vm12, %v2681_v45, %v1032_v41  ;;  %vm3077_vm14 = vcmp.lt.s32.totalorder %v809_v10, 0  ;;  %v3078_v0 = vceil.f32 %v809_v10  ;;  %v3079_v58 = vfloor.f32 %v809_v10 }
  0xe4   : > { %v1256_v39 = vsel %vm1128_vm12, %v1224_v47, %v1096_v48  ;;  %v1288_v59 = vmul.f32 0.13333334, %v1192_v21  ;;  %v1417_v60 = vmul.f32 0.13333334, %v777_v51  ;;  %v554_v17 = vsel %vm490_vm13, %v522_v30, %v394_v32 }
  0xe5   : > { %v1352_v6 = vmul.f32 0.13333334, %v1256_v39  ;;  %v3080_v36 = vsel %vm3077_vm14, %v3078_v0, %v3079_v58  ;;  %v2587_v46 = vadd.f32 -16.0, %v458_v44  ;;  %v2619_v12 = vadd.f32 -1.0, %v554_v17 }
  0xe6   : > { %v2713_v63 = vadd.f32 -1.0, %v1288_v59  ;;  %v3081_v29 = vcvt.f32.s32 %v3080_v36  ;;  %v2929_v1 = vfloor.f32 %v331_v33  ;;  %v2364_v5 = vmul.f32 %v2777_v25, %v3760_v37 }
  0xe7   : > { %v2745_v3 = vadd.f32 -1.0, %v1352_v6  ;;  %v618_v7 = vsel %vm490_vm13, %v2587_v46, %v458_v44  ;;  %v332_v55 = vmul.f32 %v3681_v2, %v293_v35  ;;  %v2778_v13 = vadd.f32 -1.0, %v1417_v60 }
  0xe8   : > { %v1485_v8 = vmul.f32 %v2713_v63, %v3758_v38  ;;  %v873_v4 = vcvt.s32.f32 %v3081_v29  ;;  %vm650_vm0 = vcmp.lt.f32.partialorder %v618_v7, 0.0  ;;  %v746_v49 = vadd.f32 16.0, %v618_v7 }
  0xe9   : > { %v2296_v61 = vmul.f32 %v2745_v3, %v3801_v34  ;;  %v714_v50 = vsel %vm650_vm0, %v2619_v12, %v554_v17  ;;  %v2930_v11 = vsel %vm2927_vm15, %v2928_v53, %v2929_v1  ;;  %v3918_v23 = vadd.s32 1664, %v3667_v57 }
  0xea   : > { %v1822_v18 = vadd.f32 %v1821_v15, %v1485_v8  ;;  %v905_v9 = vmul.f32 16.0, %v873_v4  ;;  %v810_v19 = vmul.f32 %v714_v50, %v3681_v2  ;;  %v1001_v24 = vadd.f32 1.0, %v873_v4 }
  0xeb   : > { %v778_v25 = vsel %vm650_vm0, %v746_v49, %v618_v7  ;;  %v2931_v32 = vcvt.f32.s32 %v2930_v11  ;;  %v2933_v26 = vceil.f32 %v332_v55  ;;  %v2934_v27 = vfloor.f32 %v332_v55 }
  0xec   : > { %v2328_v22 = vadd.f32 %v2296_v61, %v1822_v18  ;;  %v937_v33 = vsub.f32 %v713_v42, %v905_v9  ;;  %vm3082_vm1 = vcmp.lt.s32.totalorder %v810_v19, 0  ;;  %v3083_v54 = vceil.f32 %v810_v19 }
  0xed   : > { %v3084_v62 = vfloor.f32 %v810_v19  ;;  %v1418_v16 = vmul.f32 0.13333334, %v778_v25  ;;  %v395_v31 = vcvt.s32.f32 %v2931_v32  ;;  %v294_v40 = vcvt.s32.f32 %v3918_v23 }
  0xee   : > { %v2396_v43 = vadd.f32 %v2364_v5, %v2328_v22  ;;  %vm969_vm2 = vcmp.ge.f32.partialorder %v937_v33, 16.0  ;;  %v2650_v30 = vadd.f32 -16.0, %v937_v33  ;;  %vm2932_vm3 = vcmp.lt.s32.totalorder %v332_v55, 0 }
  0xef   : > { %v1033_v28 = vsel %vm969_vm2, %v1001_v24, %v873_v4  ;;  %v3085_v41 = vsel %vm3082_vm1, %v3083_v54, %v3084_v62  ;;  %v427_v14 = vmul.f32 16.0, %v395_v31  ;;  %v523_v42 = vadd.f32 1.0, %v395_v31  ;;  %v1841_v4 = vpop.f32.mrf.mxu1 }
  0xf0   : > { %2428 = vst [vmem:[%s3835_s19 + $0x40] sm:$0xff] %v2396_v43  ;;  %v1097_v44 = vsel %vm969_vm2, %v2650_v30, %v937_v33  ;;  %v2682_v48 = vadd.f32 -1.0, %v1033_v28  ;;  %v3086_v45 = vcvt.f32.s32 %v3085_v41  ;;  %v2779_v53 = vadd.f32 -1.0, %v1418_v16 }
  0xf1   : > { %vm1129_vm4 = vcmp.lt.f32.partialorder %v1097_v44, 0.0  ;;  %v1225_v10 = vadd.f32 16.0, %v1097_v44  ;;  %v459_v47 = vsub.f32 %v292_v52, %v427_v14  ;;  %v2935_v0 = vsel %vm2932_vm3, %v2933_v26, %v2934_v27 }
  0xf2   : > { %v1193_v51 = vsel %vm1129_vm4, %v2682_v48, %v1033_v28  ;;  %v874_v21 = vcvt.s32.f32 %v3086_v45  ;;  %v3927_v58 = vmul.f32 %v3681_v2, %v294_v40  ;;  %v2936_v52 = vcvt.f32.s32 %v2935_v0 }
  0xf3   : > { %v1257_v39 = vsel %vm1129_vm4, %v1225_v10, %v1097_v44  ;;  %v1289_v59 = vmul.f32 0.13333334, %v1193_v51  ;;  %vm491_vm5 = vcmp.ge.f32.partialorder %v459_v47, 16.0  ;;  %v2588_v60 = vadd.f32 -16.0, %v459_v47 }
  0xf4   : > { %v1353_v17 = vmul.f32 0.13333334, %v1257_v39  ;;  %v906_v6 = vmul.f32 16.0, %v874_v21  ;;  %v1002_v36 = vadd.f32 1.0, %v874_v21  ;;  %v555_v46 = vsel %vm491_vm5, %v523_v42, %v395_v31  ;;  %v1861_v42 = vpop.f32.mrf.mxu2 }
  0xf5   : > { %v2714_v12 = vadd.f32 -1.0, %v1289_v59  ;;  %v619_v63 = vsel %vm491_vm5, %v2588_v60, %v459_v47  ;;  %v2620_v56 = vadd.f32 -1.0, %v555_v46  ;;  %v2365_v7 = vmul.f32 %v2778_v13, %v3760_v37 }
  0xf6   : > { %v2746_v29 = vadd.f32 -1.0, %v1353_v17  ;;  %v938_v1 = vsub.f32 %v714_v50, %v906_v6  ;;  %vm651_vm6 = vcmp.lt.f32.partialorder %v619_v63, 0.0  ;;  %v747_v3 = vadd.f32 16.0, %v619_v63 }
  0xf7   : > { %v1486_v5 = vmul.f32 %v2714_v12, %v3758_v38  ;;  %v715_v55 = vsel %vm651_vm6, %v2620_v56, %v555_v46  ;;  %v396_v8 = vcvt.s32.f32 %v2936_v52  ;;  %v2366_v49 = vmul.f32 %v2779_v53, %v3760_v37 }
  0xf8   : > { %v2297_v15 = vmul.f32 %v2746_v29, %v3801_v34  ;;  %vm970_vm7 = vcmp.ge.f32.partialorder %v938_v1, 16.0  ;;  %v2651_v61 = vadd.f32 -16.0, %v938_v1  ;;  %v811_v50 = vmul.f32 %v715_v55, %v3681_v2 }
  0xf9   : > { %v1842_v11 = vadd.f32 %v1841_v4, %v1486_v5  ;;  %v1034_v18 = vsel %vm970_vm7, %v1002_v36, %v874_v21  ;;  %vm2937_vm8 = vcmp.lt.s32.totalorder %v3927_v58, 0  ;;  %v779_v13 = vsel %vm651_vm6, %v747_v3, %v619_v63 }
  0xfa   : > { %v1098_v9 = vsel %vm970_vm7, %v2651_v61, %v938_v1  ;;  %v2683_v19 = vadd.f32 -1.0, %v1034_v18  ;;  %v428_v24 = vmul.f32 16.0, %v396_v8  ;;  %vm3087_vm10 = vcmp.lt.s32.totalorder %v811_v50, 0 }
  0xfb   : > { %v2329_v25 = vadd.f32 %v2297_v15, %v1842_v11  ;;  %vm1130_vm9 = vcmp.lt.f32.partialorder %v1098_v9, 0.0  ;;  %v1226_v32 = vadd.f32 16.0, %v1098_v9  ;;  %v3088_v22 = vceil.f32 %v811_v50 }
  0xfc   : > { %v1194_v26 = vsel %vm1130_vm9, %v2683_v19, %v1034_v18  ;;  %v3089_v33 = vfloor.f32 %v811_v50  ;;  %v524_v54 = vadd.f32 1.0, %v396_v8  ;;  %v460_v27 = vsub.f32 %v293_v35, %v428_v24 }
  0xfd   : > { %v2397_v62 = vadd.f32 %v2365_v7, %v2329_v25  ;;  %v1258_v16 = vsel %vm1130_vm9, %v1226_v32, %v1098_v9  ;;  %v1290_v31 = vmul.f32 0.13333334, %v1194_v26  ;;  %v1419_v28 = vmul.f32 0.13333334, %v779_v13 }
  0xfe   : > { %v1354_v43 = vmul.f32 0.13333334, %v1258_v16  ;;  %v3090_v30 = vsel %vm3087_vm10, %v3088_v22, %v3089_v33  ;;  %v2938_v41 = vceil.f32 %v3927_v58  ;;  %vm492_vm11 = vcmp.ge.f32.partialorder %v460_v27, 16.0 }
  0xff   : > { %2429 = vst [vmem:[%s3835_s19 + $0x48] sm:$0xff] %v2397_v62  ;;  %v2715_v14 = vadd.f32 -1.0, %v1290_v31  ;;  %v3091_v44 = vcvt.f32.s32 %v3090_v30  ;;  %v2589_v48 = vadd.f32 -16.0, %v460_v27  ;;  %v556_v10 = vsel %vm492_vm11, %v524_v54, %v396_v8 }
 0x100   : > { %v2747_v45 = vadd.f32 -1.0, %v1354_v43  ;;  %v2939_v53 = vfloor.f32 %v3927_v58  ;;  %v3943_v47 = vadd.s32 1792, %v3667_v57  ;;  %v2621_v21 = vadd.f32 -1.0, %v556_v10 }
 0x101   : > { %v1487_v20 = vmul.f32 %v2715_v14, %v3758_v38  ;;  %v875_v35 = vcvt.s32.f32 %v3091_v44  ;;  %v620_v51 = vsel %vm492_vm11, %v2589_v48, %v460_v27  ;;  %v2780_v6 = vadd.f32 -1.0, %v1419_v28  ;;  %v1881_v14 = vpop.f32.mrf.mxu3 }
 0x102   : > { %v2298_v0 = vmul.f32 %v2747_v45, %v3801_v34  ;;  %vm652_vm12 = vcmp.lt.f32.partialorder %v620_v51, 0.0  ;;  %v748_v39 = vadd.f32 16.0, %v620_v51  ;;  %v2940_v59 = vsel %vm2937_vm8, %v2938_v41, %v2939_v53 }
 0x103   : > { %v1862_v60 = vadd.f32 %v1861_v42, %v1487_v20  ;;  %v907_v17 = vmul.f32 16.0, %v875_v35  ;;  %v716_v36 = vsel %vm652_vm12, %v2621_v21, %v556_v10  ;;  %v1003_v46 = vadd.f32 1.0, %v875_v35 }
 0x104   : > { %v780_v12 = vsel %vm652_vm12, %v748_v39, %v620_v51  ;;  %v812_v63 = vmul.f32 %v716_v36, %v3681_v2  ;;  %v2941_v56 = vcvt.f32.s32 %v2940_v59  ;;  %v295_v3 = vcvt.s32.f32 %v3943_v47 }
 0x105   : > { %v2330_v52 = vadd.f32 %v2298_v0, %v1862_v60  ;;  %v939_v29 = vsub.f32 %v715_v55, %v907_v17  ;;  %v1420_v1 = vmul.f32 0.13333334, %v780_v12  ;;  %v3952_v15 = vadd.s32 1920, %v3667_v57 }
 0x106   : > { %vm3092_vm13 = vcmp.lt.s32.totalorder %v812_v63, 0  ;;  %v3093_v5 = vceil.f32 %v812_v63  ;;  %v3094_v7 = vfloor.f32 %v812_v63  ;;  %v397_v58 = vcvt.s32.f32 %v2941_v56 }
 0x107   : > { %v2398_v8 = vadd.f32 %v2366_v49, %v2330_v52  ;;  %vm971_vm14 = vcmp.ge.f32.partialorder %v939_v29, 16.0  ;;  %v2652_v4 = vadd.f32 -16.0, %v939_v29  ;;  %v2367_v11 = vmul.f32 %v2780_v6, %v3760_v37 }
 0x108   : > { %v1035_v61 = vsel %vm971_vm14, %v1003_v46, %v875_v35  ;;  %v3095_v18 = vsel %vm3092_vm13, %v3093_v5, %v3094_v7  ;;  %v429_v50 = vmul.f32 16.0, %v397_v58  ;;  %v525_v13 = vadd.f32 1.0, %v397_v58 }
 0x109   : > { %2430 = vst [vmem:[%s3835_s19 + $0x50] sm:$0xff] %v2398_v8  ;;  %v1099_v55 = vsel %vm971_vm14, %v2652_v4, %v939_v29  ;;  %v2684_v9 = vadd.f32 -1.0, %v1035_v61  ;;  %v3096_v19 = vcvt.f32.s32 %v3095_v18  ;;  %v334_v25 = vmul.f32 %v3681_v2, %v295_v3 }
 0x10a   : > { %vm1131_vm15 = vcmp.lt.f32.partialorder %v1099_v55, 0.0  ;;  %v1227_v24 = vadd.f32 16.0, %v1099_v55  ;;  %v461_v49 = vsub.f32 %v294_v40, %v429_v50  ;;  %v2781_v22 = vadd.f32 -1.0, %v1420_v1 }
 0x10b   : > { %v1195_v32 = vsel %vm1131_vm15, %v2684_v9, %v1035_v61  ;;  %v876_v26 = vcvt.s32.f32 %v3096_v19  ;;  %v296_v33 = vcvt.s32.f32 %v3952_v15  ;;  %vm2942_vm1 = vcmp.lt.s32.totalorder %v334_v25, 0 }
 0x10c   : > { %v1259_v54 = vsel %vm1131_vm15, %v1227_v24, %v1099_v55  ;;  %v1291_v62 = vmul.f32 0.13333334, %v1195_v32  ;;  %vm493_vm0 = vcmp.ge.f32.partialorder %v461_v49, 16.0  ;;  %v2590_v16 = vadd.f32 -16.0, %v461_v49 }
 0x10d   : > { %v1355_v31 = vmul.f32 0.13333334, %v1259_v54  ;;  %v908_v27 = vmul.f32 16.0, %v876_v26  ;;  %v1004_v43 = vadd.f32 1.0, %v876_v26  ;;  %v557_v30 = vsel %vm493_vm0, %v525_v13, %v397_v58  ;;  %v1901_v54 = vpop.f32.mrf.mxu0 }
 0x10e   : > { %v2716_v28 = vadd.f32 -1.0, %v1291_v62  ;;  %v621_v23 = vsel %vm493_vm0, %v2590_v16, %v461_v49  ;;  %v2622_v40 = vadd.f32 -1.0, %v557_v30  ;;  %v2943_v10 = vceil.f32 %v334_v25 }
 0x10f   : > { %v2748_v41 = vadd.f32 -1.0, %v1355_v31  ;;  %v940_v44 = vsub.f32 %v716_v36, %v908_v27  ;;  %vm653_vm2 = vcmp.lt.f32.partialorder %v621_v23, 0.0  ;;  %v749_v48 = vadd.f32 16.0, %v621_v23 }
 0x110   : > { %v1488_v45 = vmul.f32 %v2716_v28, %v3758_v38  ;;  %v717_v42 = vsel %vm653_vm2, %v2622_v40, %v557_v30  ;;  %v2944_v53 = vfloor.f32 %v334_v25  ;;  %v335_v36 = vmul.f32 %v3681_v2, %v296_v33 }
 0x111   : > { %v2299_v20 = vmul.f32 %v2748_v41, %v3801_v34  ;;  %vm972_vm3 = vcmp.ge.f32.partialorder %v940_v44, 16.0  ;;  %v2653_v35 = vadd.f32 -16.0, %v940_v44  ;;  %v781_v51 = vsel %vm653_vm2, %v749_v48, %v621_v23 }
 0x112   : > { %v1882_v21 = vadd.f32 %v1881_v14, %v1488_v45  ;;  %v1036_v0 = vsel %vm972_vm3, %v1004_v43, %v876_v26  ;;  %v813_v39 = vmul.f32 %v717_v42, %v3681_v2  ;;  %v1421_v59 = vmul.f32 0.13333334, %v781_v51 }
 0x113   : > { %v1100_v60 = vsel %vm972_vm3, %v2653_v35, %v940_v44  ;;  %v2685_v17 = vadd.f32 -1.0, %v1036_v0  ;;  %v2945_v6 = vsel %vm2942_vm1, %v2943_v10, %v2944_v53  ;;  %v3970_v29 = vadd.s32 2048, %v3667_v57 }
 0x114   : > { %v2331_v46 = vadd.f32 %v2299_v20, %v1882_v21  ;;  %vm1132_vm4 = vcmp.lt.f32.partialorder %v1100_v60, 0.0  ;;  %v1228_v12 = vadd.f32 16.0, %v1100_v60  ;;  %vm3097_vm5 = vcmp.lt.s32.totalorder %v813_v39, 0 }
 0x115   : > { %v1196_v63 = vsel %vm1132_vm4, %v2685_v17, %v1036_v0  ;;  %v3098_v56 = vceil.f32 %v813_v39  ;;  %v3099_v52 = vfloor.f32 %v813_v39  ;;  %v2946_v58 = vcvt.f32.s32 %v2945_v6 }
 0x116   : > { %v2399_v1 = vadd.f32 %v2367_v11, %v2331_v46  ;;  %v1260_v5 = vsel %vm1132_vm4, %v1228_v12, %v1100_v60  ;;  %v1292_v7 = vmul.f32 0.13333334, %v1196_v63  ;;  %v2782_v61 = vadd.f32 -1.0, %v1421_v59 }
 0x117   : > { %v1356_v8 = vmul.f32 0.13333334, %v1260_v5  ;;  %v3100_v4 = vsel %vm3097_vm5, %v3098_v56, %v3099_v52  ;;  %vm2947_vm6 = vcmp.lt.s32.totalorder %v335_v36, 0  ;;  %v398_v55 = vcvt.s32.f32 %v2946_v58 }
 0x118   : > { %2431 = vst [vmem:[%s3835_s19 + $0x58] sm:$0xff] %v2399_v1  ;;  %v2717_v18 = vadd.f32 -1.0, %v1292_v7  ;;  %v3101_v50 = vcvt.f32.s32 %v3100_v4  ;;  %v2948_v9 = vceil.f32 %v335_v36  ;;  %v2368_v13 = vmul.f32 %v2781_v22, %v3760_v37 }
 0x119   : > { %v2749_v19 = vadd.f32 -1.0, %v1356_v8  ;;  %v2949_v24 = vfloor.f32 %v335_v36  ;;  %v297_v49 = vcvt.s32.f32 %v3970_v29  ;;  %v430_v32 = vmul.f32 16.0, %v398_v55 }
 0x11a   : > { %v1489_v11 = vmul.f32 %v2717_v18, %v3758_v38  ;;  %v877_v25 = vcvt.s32.f32 %v3101_v50  ;;  %v3977_v26 = vadd.s32 2176, %v3667_v57  ;;  %v526_v16 = vadd.f32 1.0, %v398_v55 }
 0x11b   : > { %v2300_v62 = vmul.f32 %v2749_v19, %v3801_v34  ;;  %v2950_v31 = vsel %vm2947_vm6, %v2948_v9, %v2949_v24  ;;  %v336_v22 = vmul.f32 %v3681_v2, %v297_v49  ;;  %v3985_v30 = vmul.f32 %v2782_v61, %v3760_v37 }
 0x11c   : > { %v1902_v27 = vadd.f32 %v1901_v54, %v1489_v11  ;;  %v909_v43 = vmul.f32 16.0, %v877_v25  ;;  %v462_v28 = vsub.f32 %v295_v3, %v430_v32  ;;  %v1005_v23 = vadd.f32 1.0, %v877_v25  ;;  %v1921_v11 = vpop.f32.mrf.mxu1 }
 0x11d   : > { %v2951_v40 = vcvt.f32.s32 %v2950_v31  ;;  %v2953_v41 = vceil.f32 %v336_v22  ;;  %v2954_v14 = vfloor.f32 %v336_v22  ;;  %vm2952_vm8 = vcmp.lt.s32.totalorder %v336_v22, 0 }
 0x11e   : > { %v2332_v44 = vadd.f32 %v2300_v62, %v1902_v27  ;;  %v941_v48 = vsub.f32 %v717_v42, %v909_v43  ;;  %vm494_vm7 = vcmp.ge.f32.partialorder %v462_v28, 16.0  ;;  %v2591_v45 = vadd.f32 -16.0, %v462_v28 }
 0x11f   : > { %v558_v10 = vsel %vm494_vm7, %v526_v16, %v398_v55  ;;  %v399_v53 = vcvt.s32.f32 %v2951_v40  ;;  %v298_v20 = vcvt.s32.f32 %v3977_v26  ;;  %v2955_v42 = vsel %vm2952_vm8, %v2953_v41, %v2954_v14 }
 0x120   : > { %v2400_v35 = vadd.f32 %v2368_v13, %v2332_v44  ;;  %vm973_vm9 = vcmp.ge.f32.partialorder %v941_v48, 16.0  ;;  %v2654_v51 = vadd.f32 -16.0, %v941_v48  ;;  %v622_v21 = vsel %vm494_vm7, %v2591_v45, %v462_v28 }
 0x121   : > { %v1037_v47 = vsel %vm973_vm9, %v1005_v23, %v877_v25  ;;  %vm654_vm10 = vcmp.lt.f32.partialorder %v622_v21, 0.0  ;;  %v2623_v3 = vadd.f32 -1.0, %v558_v10  ;;  %v750_v0 = vadd.f32 16.0, %v622_v21 }
 0x122   : > { %2432 = vst [vmem:[%s3835_s19 + $0x60] sm:$0xff] %v2400_v35  ;;  %v1101_v39 = vsel %vm973_vm9, %v2654_v51, %v941_v48  ;;  %v2686_v59 = vadd.f32 -1.0, %v1037_v47  ;;  %v431_v60 = vmul.f32 16.0, %v399_v53  ;;  %v527_v36 = vadd.f32 1.0, %v399_v53 }
 0x123   : > { %vm1133_vm11 = vcmp.lt.f32.partialorder %v1101_v39, 0.0  ;;  %v1229_v17 = vadd.f32 16.0, %v1101_v39  ;;  %v718_v6 = vsel %vm654_vm10, %v2623_v3, %v558_v10  ;;  %v782_v12 = vsel %vm654_vm10, %v750_v0, %v622_v21 }
 0x124   : > { %v1197_v46 = vsel %vm1133_vm11, %v2686_v59, %v1037_v47  ;;  %v814_v63 = vmul.f32 %v718_v6, %v3681_v2  ;;  %v463_v56 = vsub.f32 %v296_v33, %v431_v60  ;;  %v2956_v5 = vcvt.f32.s32 %v2955_v42 }
 0x125   : > { %v1261_v52 = vsel %vm1133_vm11, %v1229_v17, %v1101_v39  ;;  %v1293_v1 = vmul.f32 0.13333334, %v1197_v46  ;;  %v337_v7 = vmul.f32 %v3681_v2, %v298_v20  ;;  %v1422_v18 = vmul.f32 0.13333334, %v782_v12 }
 0x126   : > { %v1357_v58 = vmul.f32 0.13333334, %v1261_v52  ;;  %vm3102_vm12 = vcmp.lt.s32.totalorder %v814_v63, 0  ;;  %v3103_v8 = vceil.f32 %v814_v63  ;;  %v3104_v4 = vfloor.f32 %v814_v63 }
 0x127   : > { %v2718_v61 = vadd.f32 -1.0, %v1293_v1  ;;  %vm495_vm13 = vcmp.ge.f32.partialorder %v463_v56, 16.0  ;;  %v2592_v50 = vadd.f32 -16.0, %v463_v56  ;;  %v400_v15 = vcvt.s32.f32 %v2956_v5 }
 0x128   : > { %v2750_v55 = vadd.f32 -1.0, %v1357_v58  ;;  %v3105_v9 = vsel %vm3102_vm12, %v3103_v8, %v3104_v4  ;;  %v559_v19 = vsel %vm495_vm13, %v527_v36, %v399_v53  ;;  %vm2957_vm14 = vcmp.lt.s32.totalorder %v337_v7, 0 }
 0x129   : > { %v1490_v33 = vmul.f32 %v2718_v61, %v3758_v38  ;;  %v3106_v13 = vcvt.f32.s32 %v3105_v9  ;;  %v623_v24 = vsel %vm495_vm13, %v2592_v50, %v463_v56  ;;  %v2624_v32 = vadd.f32 -1.0, %v559_v19 }
 0x12a   : > { %v2301_v25 = vmul.f32 %v2750_v55, %v3801_v34  ;;  %vm655_vm15 = vcmp.lt.f32.partialorder %v623_v24, 0.0  ;;  %v751_v54 = vadd.f32 16.0, %v623_v24  ;;  %v2783_v31 = vadd.f32 -1.0, %v1422_v18 }
 0x12b   : > { %v1922_v62 = vadd.f32 %v1921_v11, %v1490_v33  ;;  %v878_v16 = vcvt.s32.f32 %v3106_v13  ;;  %v432_v22 = vmul.f32 16.0, %v400_v15  ;;  %v719_v27 = vsel %vm655_vm15, %v2624_v32, %v559_v19 }
 0x12c   : > { %v783_v43 = vsel %vm655_vm15, %v751_v54, %v623_v24  ;;  %v2958_v28 = vceil.f32 %v337_v7  ;;  %v2959_v23 = vfloor.f32 %v337_v7  ;;  %v815_v14 = vmul.f32 %v719_v27, %v3681_v2  ;;  %v1941_v24 = vpop.f32.mrf.mxu2 }
 0x12d   : > { %v2333_v40 = vadd.f32 %v2301_v25, %v1922_v62  ;;  %v910_v41 = vmul.f32 16.0, %v878_v16  ;;  %v528_v44 = vadd.f32 1.0, %v400_v15  ;;  %v1006_v48 = vadd.f32 1.0, %v878_v16 }
 0x12e   : > { %v1423_v45 = vmul.f32 0.13333334, %v783_v43  ;;  %v464_v10 = vsub.f32 %v297_v49, %v432_v22  ;;  %v2960_v53 = vsel %vm2957_vm14, %v2958_v28, %v2959_v23  ;;  %vm3107_vm0 = vcmp.lt.s32.totalorder %v815_v14, 0 }
 0x12f   : > { %v2401_v35 = vadd.f32 %v3985_v30, %v2333_v40  ;;  %v942_v51 = vsub.f32 %v718_v6, %v910_v41  ;;  %v3108_v21 = vceil.f32 %v815_v14  ;;  %v3109_v47 = vfloor.f32 %v815_v14 }
 0x130   : > { %vm496_vm1 = vcmp.ge.f32.partialorder %v464_v10, 16.0  ;;  %v2593_v3 = vadd.f32 -16.0, %v464_v10  ;;  %v4005_v0 = vadd.s32 2304, %v3667_v57  ;;  %v2961_v60 = vcvt.f32.s32 %v2960_v53 }
 0x131   : > { %2433 = vst [vmem:[%s3835_s19 + $0x68] sm:$0xff] %v2401_v35  ;;  %vm974_vm2 = vcmp.ge.f32.partialorder %v942_v51, 16.0  ;;  %v2655_v39 = vadd.f32 -16.0, %v942_v51  ;;  %v560_v59 = vsel %vm496_vm1, %v528_v44, %v400_v15  ;;  %v3110_v49 = vsel %vm3107_vm0, %v3108_v21, %v3109_v47 }
 0x132   : > { %v1038_v29 = vsel %vm974_vm2, %v1006_v48, %v878_v16  ;;  %v2784_v42 = vadd.f32 -1.0, %v1423_v45  ;;  %v624_v17 = vsel %vm496_vm1, %v2593_v3, %v464_v10  ;;  %v3111_v6 = vcvt.f32.s32 %v3110_v49 }
 0x133   : > { %v1102_v36 = vsel %vm974_vm2, %v2655_v39, %v942_v51  ;;  %v2687_v30 = vadd.f32 -1.0, %v1038_v29  ;;  %vm656_vm3 = vcmp.lt.f32.partialorder %v624_v17, 0.0  ;;  %v2625_v12 = vadd.f32 -1.0, %v560_v59 }
 0x134   : > { %vm1134_vm4 = vcmp.lt.f32.partialorder %v1102_v36, 0.0  ;;  %v1230_v46 = vadd.f32 16.0, %v1102_v36  ;;  %v752_v63 = vadd.f32 16.0, %v624_v17  ;;  %v2370_v52 = vmul.f32 %v2783_v31, %v3760_v37 }
 0x135   : > { %v1198_v56 = vsel %vm1134_vm4, %v2687_v30, %v1038_v29  ;;  %v879_v1 = vcvt.s32.f32 %v3111_v6  ;;  %v401_v5 = vcvt.s32.f32 %v2961_v60  ;;  %v4010_v8 = vmul.f32 %v2784_v42, %v3760_v37 }
 0x136   : > { %v1262_v7 = vsel %vm1134_vm4, %v1230_v46, %v1102_v36  ;;  %v1294_v58 = vmul.f32 0.13333334, %v1198_v56  ;;  %v720_v4 = vsel %vm656_vm3, %v2625_v12, %v560_v59  ;;  %v299_v55 = vcvt.s32.f32 %v4005_v0  ;;  %v1961_v36 = vpop.f32.mrf.mxu3 }
 0x137   : > { %v1358_v61 = vmul.f32 0.13333334, %v1262_v7  ;;  %v911_v18 = vmul.f32 16.0, %v879_v1  ;;  %v816_v50 = vmul.f32 %v720_v4, %v3681_v2  ;;  %v1007_v19 = vadd.f32 1.0, %v879_v1 }
 0x138   : > { %v2719_v9 = vadd.f32 -1.0, %v1294_v58  ;;  %v784_v15 = vsel %vm656_vm3, %v752_v63, %v624_v17  ;;  %v433_v33 = vmul.f32 16.0, %v401_v5  ;;  %v529_v16 = vadd.f32 1.0, %v401_v5 }
 0x139   : > { %v2751_v13 = vadd.f32 -1.0, %v1358_v61  ;;  %v943_v11 = vsub.f32 %v719_v27, %v911_v18  ;;  %vm3112_vm5 = vcmp.lt.s32.totalorder %v816_v50, 0  ;;  %v3113_v25 = vceil.f32 %v816_v50 }
 0x13a   : > { %v1491_v32 = vmul.f32 %v2719_v9, %v3758_v38  ;;  %v3114_v54 = vfloor.f32 %v816_v50  ;;  %v465_v62 = vsub.f32 %v298_v20, %v433_v33  ;;  %v1424_v43 = vmul.f32 0.13333334, %v784_v15 }
 0x13b   : > { %v2302_v31 = vmul.f32 %v2751_v13, %v3801_v34  ;;  %vm975_vm6 = vcmp.ge.f32.partialorder %v943_v11, 16.0  ;;  %v2656_v22 = vadd.f32 -16.0, %v943_v11  ;;  %v338_v27 = vmul.f32 %v3681_v2, %v299_v55 }
 0x13c   : > { %v1942_v28 = vadd.f32 %v1941_v24, %v1491_v32  ;;  %v1039_v23 = vsel %vm975_vm6, %v1007_v19, %v879_v1  ;;  %v3115_v40 = vsel %vm3112_vm5, %v3113_v25, %v3114_v54  ;;  %vm497_vm7 = vcmp.ge.f32.partialorder %v465_v62, 16.0 }
 0x13d   : > { %v1103_v41 = vsel %vm975_vm6, %v2656_v22, %v943_v11  ;;  %v2688_v14 = vadd.f32 -1.0, %v1039_v23  ;;  %v3116_v44 = vcvt.f32.s32 %v3115_v40  ;;  %v561_v20 = vsel %vm497_vm7, %v529_v16, %v401_v5 }
 0x13e   : > { %v2334_v48 = vadd.f32 %v2302_v31, %v1942_v28  ;;  %vm1135_vm8 = vcmp.lt.f32.partialorder %v1103_v41, 0.0  ;;  %v1231_v26 = vadd.f32 16.0, %v1103_v41  ;;  %v2594_v53 = vadd.f32 -16.0, %v465_v62 }
 0x13f   : > { %v1199_v45 = vsel %vm1135_vm8, %v2688_v14, %v1039_v23  ;;  %v880_v10 = vcvt.s32.f32 %v3116_v44  ;;  %v2626_v35 = vadd.f32 -1.0, %v561_v20  ;;  %v2785_v3 = vadd.f32 -1.0, %v1424_v43 }
 0x140   : > { %v2402_v51 = vadd.f32 %v2370_v52, %v2334_v48  ;;  %v1263_v21 = vsel %vm1135_vm8, %v1231_v26, %v1103_v41  ;;  %v1295_v47 = vmul.f32 0.13333334, %v1199_v45  ;;  %v625_v60 = vsel %vm497_vm7, %v2594_v53, %v465_v62 }
 0x141   : > { %v1359_v39 = vmul.f32 0.13333334, %v1263_v21  ;;  %v912_v59 = vmul.f32 16.0, %v880_v10  ;;  %vm2962_vm9 = vcmp.lt.s32.totalorder %v338_v27, 0  ;;  %v1008_v49 = vadd.f32 1.0, %v880_v10 }
 0x142   : > { %2434 = vst [vmem:[%s3835_s19 + $0x70] sm:$0xff] %v2402_v51  ;;  %v2720_v29 = vadd.f32 -1.0, %v1295_v47  ;;  %vm657_vm10 = vcmp.lt.f32.partialorder %v625_v60, 0.0  ;;  %v753_v42 = vadd.f32 16.0, %v625_v60  ;;  %v2963_v46 = vceil.f32 %v338_v27 }
 0x143   : > { %v2752_v17 = vadd.f32 -1.0, %v1359_v39  ;;  %v944_v30 = vsub.f32 %v720_v4, %v912_v59  ;;  %v721_v6 = vsel %vm657_vm10, %v2626_v35, %v561_v20  ;;  %v2964_v52 = vfloor.f32 %v338_v27  ;;  %v1981_v35 = vpop.f32.mrf.mxu0 }
 0x144   : > { %v1492_v12 = vmul.f32 %v2720_v29, %v3758_v38  ;;  %v785_v63 = vsel %vm657_vm10, %v753_v42, %v625_v60  ;;  %v817_v56 = vmul.f32 %v721_v6, %v3681_v2  ;;  %v4028_v7 = vadd.s32 2432, %v3667_v57 }
 0x145   : > { %v2303_v1 = vmul.f32 %v2752_v17, %v3801_v34  ;;  %vm976_vm11 = vcmp.ge.f32.partialorder %v944_v30, 16.0  ;;  %v2657_v5 = vadd.f32 -16.0, %v944_v30  ;;  %v1425_v19 = vmul.f32 0.13333334, %v785_v63 }
 0x146   : > { %v1962_v58 = vadd.f32 %v1961_v36, %v1492_v12  ;;  %v1040_v61 = vsel %vm976_vm11, %v1008_v49, %v880_v10  ;;  %vm3117_vm12 = vcmp.lt.s32.totalorder %v817_v56, 0  ;;  %v3118_v18 = vceil.f32 %v817_v56 }
 0x147   : > { %v1104_v4 = vsel %vm976_vm11, %v2657_v5, %v944_v30  ;;  %v2689_v50 = vadd.f32 -1.0, %v1040_v61  ;;  %v3119_v9 = vfloor.f32 %v817_v56  ;;  %v2965_v13 = vsel %vm2962_vm9, %v2963_v46, %v2964_v52 }
 0x148   : > { %v2335_v15 = vadd.f32 %v2303_v1, %v1962_v58  ;;  %vm1136_vm13 = vcmp.lt.f32.partialorder %v1104_v4, 0.0  ;;  %v1232_v33 = vadd.f32 16.0, %v1104_v4  ;;  %v2372_v11 = vmul.f32 %v2785_v3, %v3760_v37 }
 0x149   : > { %v1200_v24 = vsel %vm1136_vm13, %v2689_v50, %v1040_v61  ;;  %v3120_v25 = vsel %vm3117_vm12, %v3118_v18, %v3119_v9  ;;  %v2966_v32 = vcvt.f32.s32 %v2965_v13  ;;  %v300_v28 = vcvt.s32.f32 %v4028_v7 }
 0x14a   : > { %v2403_v54 = vadd.f32 %v4010_v8, %v2335_v15  ;;  %v1264_v62 = vsel %vm1136_vm13, %v1232_v33, %v1104_v4  ;;  %v1296_v16 = vmul.f32 0.13333334, %v1200_v24  ;;  %v3121_v31 = vcvt.f32.s32 %v3120_v25 }
 0x14b   : > { %v1360_v22 = vmul.f32 0.13333334, %v1264_v62  ;;  %v402_v43 = vcvt.s32.f32 %v2966_v32  ;;  %v4035_v23 = vadd.s32 2560, %v3667_v57  ;;  %v2786_v41 = vadd.f32 -1.0, %v1425_v19 }
 0x14c   : > { %2435 = vst [vmem:[%s3835_s19 + $0x78] sm:$0xff] %v2403_v54  ;;  %v2721_v40 = vadd.f32 -1.0, %v1296_v16  ;;  %v881_v27 = vcvt.s32.f32 %v3121_v31  ;;  %v4039_v14 = vadd.s32 2688, %v3667_v57  ;;  %v339_v8 = vmul.f32 %v3681_v2, %v300_v28 }
 0x14d   : > { %v2753_v44 = vadd.f32 -1.0, %v1360_v22  ;;  %v434_v48 = vmul.f32 16.0, %v402_v43  ;;  %v4045_v26 = vadd.s32 2816, %v3667_v57  ;;  %v530_v10 = vadd.f32 1.0, %v402_v43 }
 0x14e   : > { %v1493_v20 = vmul.f32 %v2721_v40, %v3758_v38  ;;  %v913_v45 = vmul.f32 16.0, %v881_v27  ;;  %v301_v53 = vcvt.s32.f32 %v4035_v23  ;;  %v1009_v21 = vadd.f32 1.0, %v881_v27 }
 0x14f   : > { %v2304_v51 = vmul.f32 %v2753_v44, %v3801_v34  ;;  %v466_v47 = vsub.f32 %v299_v55, %v434_v48  ;;  %v2968_v3 = vceil.f32 %v339_v8  ;;  %vm2967_vm14 = vcmp.lt.s32.totalorder %v339_v8, 0  ;;  %v2001_v44 = vpop.f32.mrf.mxu1 }
 0x150   : > { %v1982_v39 = vadd.f32 %v1981_v35, %v1493_v20  ;;  %v945_v59 = vsub.f32 %v721_v6, %v913_v45  ;;  %v2969_v60 = vfloor.f32 %v339_v8  ;;  %v340_v49 = vmul.f32 %v3681_v2, %v301_v53 }
 0x151   : > { %vm498_vm15 = vcmp.ge.f32.partialorder %v466_v47, 16.0  ;;  %v2595_v29 = vadd.f32 -16.0, %v466_v47  ;;  %v302_v42 = vcvt.s32.f32 %v4039_v14  ;;  %v303_v4 = vcvt.s32.f32 %v4045_v26 }
 0x152   : > { %v2336_v17 = vadd.f32 %v2304_v51, %v1982_v39  ;;  %vm977_vm0 = vcmp.ge.f32.partialorder %v945_v59, 16.0  ;;  %v2658_v36 = vadd.f32 -16.0, %v945_v59  ;;  %v562_v30 = vsel %vm498_vm15, %v530_v10, %v402_v43 }
 0x153   : > { %v1041_v0 = vsel %vm977_vm0, %v1009_v21, %v881_v27  ;;  %v626_v55 = vsel %vm498_vm15, %v2595_v29, %v466_v47  ;;  %v2627_v46 = vadd.f32 -1.0, %v562_v30  ;;  %v2970_v12 = vsel %vm2967_vm14, %v2968_v3, %v2969_v60 }
 0x154   : > { %v2404_v6 = vadd.f32 %v2372_v11, %v2336_v17  ;;  %v1105_v63 = vsel %vm977_vm0, %v2658_v36, %v945_v59  ;;  %v2690_v56 = vadd.f32 -1.0, %v1041_v0  ;;  %vm658_vm1 = vcmp.lt.f32.partialorder %v626_v55, 0.0 }
 0x155   : > { %vm1137_vm2 = vcmp.lt.f32.partialorder %v1105_v63, 0.0  ;;  %v1233_v52 = vadd.f32 16.0, %v1105_v63  ;;  %v722_v1 = vsel %vm658_vm1, %v2627_v46, %v562_v30  ;;  %v754_v5 = vadd.f32 16.0, %v626_v55 }
 0x156   : > { %2436 = vst [vmem:[%s3835_s19 + $0x80] sm:$0xff] %v2404_v6  ;;  %v1201_v58 = vsel %vm1137_vm2, %v2690_v56, %v1041_v0  ;;  %v818_v61 = vmul.f32 %v722_v1, %v3681_v2  ;;  %v2971_v18 = vcvt.f32.s32 %v2970_v12  ;;  %v2973_v15 = vceil.f32 %v340_v49 }
 0x157   : > { %v1265_v50 = vsel %vm1137_vm2, %v1233_v52, %v1105_v63  ;;  %v1297_v9 = vmul.f32 0.13333334, %v1201_v58  ;;  %v786_v19 = vsel %vm658_vm1, %v754_v5, %v626_v55  ;;  %vm2972_vm4 = vcmp.lt.s32.totalorder %v340_v49, 0 }
 0x158   : > { %v1361_v33 = vmul.f32 0.13333334, %v1265_v50  ;;  %vm3122_vm3 = vcmp.lt.s32.totalorder %v818_v61, 0  ;;  %v3123_v13 = vceil.f32 %v818_v61  ;;  %v3124_v24 = vfloor.f32 %v818_v61 }
 0x159   : > { %v2722_v11 = vadd.f32 -1.0, %v1297_v9  ;;  %v403_v25 = vcvt.s32.f32 %v2971_v18  ;;  %v2974_v32 = vfloor.f32 %v340_v49  ;;  %v1426_v16 = vmul.f32 0.13333334, %v786_v19 }
 0x15a   : > { %v2754_v54 = vadd.f32 -1.0, %v1361_v33  ;;  %v3125_v62 = vsel %vm3122_vm3, %v3123_v13, %v3124_v24  ;;  %v341_v31 = vmul.f32 %v3681_v2, %v302_v42  ;;  %v2373_v43 = vmul.f32 %v2786_v41, %v3760_v37 }
 0x15b   : > { %v1494_v22 = vmul.f32 %v2722_v11, %v3758_v38  ;;  %v3126_v40 = vcvt.f32.s32 %v3125_v62  ;;  %v435_v27 = vmul.f32 16.0, %v403_v25  ;;  %v531_v8 = vadd.f32 1.0, %v403_v25 }
 0x15c   : > { %v2305_v48 = vmul.f32 %v2754_v54, %v3801_v34  ;;  %v2975_v20 = vsel %vm2972_vm4, %v2973_v15, %v2974_v32  ;;  %v4068_v45 = vmul.f32 %v3681_v2, %v303_v4  ;;  %vm2977_vm5 = vcmp.lt.s32.totalorder %v341_v31, 0 }
 0x15d   : > { %v2002_v10 = vadd.f32 %v2001_v44, %v1494_v22  ;;  %v882_v35 = vcvt.s32.f32 %v3126_v40  ;;  %v467_v51 = vsub.f32 %v300_v28, %v435_v27  ;;  %v2787_v21 = vadd.f32 -1.0, %v1426_v16  ;;  %v2021_v27 = vpop.f32.mrf.mxu2 }
 0x15e   : > { %v2976_v41 = vcvt.f32.s32 %v2975_v20  ;;  %v2978_v47 = vceil.f32 %v341_v31  ;;  %v2979_v3 = vfloor.f32 %v341_v31  ;;  %vm2982_vm9 = vcmp.lt.s32.totalorder %v4068_v45, 0 }
 0x15f   : > { %v2337_v39 = vadd.f32 %v2305_v48, %v2002_v10  ;;  %v914_v59 = vmul.f32 16.0, %v882_v35  ;;  %v1010_v60 = vadd.f32 1.0, %v882_v35  ;;  %vm499_vm6 = vcmp.ge.f32.partialorder %v467_v51, 16.0 }
 0x160   : > { %v563_v29 = vsel %vm499_vm6, %v531_v8, %v403_v25  ;;  %v2596_v49 = vadd.f32 -16.0, %v467_v51  ;;  %v404_v17 = vcvt.s32.f32 %v2976_v41  ;;  %v2980_v36 = vsel %vm2977_vm5, %v2978_v47, %v2979_v3 }
 0x161   : > { %v2405_v30 = vadd.f32 %v2373_v43, %v2337_v39  ;;  %v946_v0 = vsub.f32 %v722_v1, %v914_v59  ;;  %v2628_v55 = vadd.f32 -1.0, %v563_v29  ;;  %v4073_v7 = vmul.f32 %v2787_v21, %v3760_v37 }
 0x162   : > { %v627_v28 = vsel %vm499_vm6, %v2596_v49, %v467_v51  ;;  %v436_v46 = vmul.f32 16.0, %v404_v17  ;;  %v2981_v12 = vcvt.f32.s32 %v2980_v36  ;;  %v532_v1 = vadd.f32 1.0, %v404_v17 }
 0x163   : > { %2437 = vst [vmem:[%s3835_s19 + $0x88] sm:$0xff] %v2405_v30  ;;  %vm978_vm7 = vcmp.ge.f32.partialorder %v946_v0, 16.0  ;;  %v2659_v6 = vadd.f32 -16.0, %v946_v0  ;;  %vm659_vm8 = vcmp.lt.f32.partialorder %v627_v28, 0.0  ;;  %v755_v63 = vadd.f32 16.0, %v627_v28 }
 0x164   : > { %v1042_v56 = vsel %vm978_vm7, %v1010_v60, %v882_v35  ;;  %v723_v52 = vsel %vm659_vm8, %v2628_v55, %v563_v29  ;;  %v468_v5 = vsub.f32 %v301_v53, %v436_v46  ;;  %v405_v19 = vcvt.s32.f32 %v2981_v12 }
 0x165   : > { %v1106_v58 = vsel %vm978_vm7, %v2659_v6, %v946_v0  ;;  %v2691_v61 = vadd.f32 -1.0, %v1042_v56  ;;  %v787_v18 = vsel %vm659_vm8, %v755_v63, %v627_v28  ;;  %v819_v50 = vmul.f32 %v723_v52, %v3681_v2 }
 0x166   : > { %vm1138_vm10 = vcmp.lt.f32.partialorder %v1106_v58, 0.0  ;;  %v1234_v9 = vadd.f32 16.0, %v1106_v58  ;;  %vm500_vm11 = vcmp.ge.f32.partialorder %v468_v5, 16.0  ;;  %v1427_v25 = vmul.f32 0.13333334, %v787_v18 }
 0x167   : > { %v1202_v15 = vsel %vm1138_vm10, %v2691_v61, %v1042_v56  ;;  %vm3127_vm12 = vcmp.lt.s32.totalorder %v819_v50, 0  ;;  %v3128_v33 = vceil.f32 %v819_v50  ;;  %v3129_v13 = vfloor.f32 %v819_v50 }
 0x168   : > { %v1266_v24 = vsel %vm1138_vm10, %v1234_v9, %v1106_v58  ;;  %v1298_v11 = vmul.f32 0.13333334, %v1202_v15  ;;  %v564_v23 = vsel %vm500_vm11, %v532_v1, %v404_v17  ;;  %v2597_v54 = vadd.f32 -16.0, %v468_v5 }
 0x169   : > { %v1362_v53 = vmul.f32 0.13333334, %v1266_v24  ;;  %v3130_v32 = vsel %vm3127_vm12, %v3128_v33, %v3129_v13  ;;  %v2629_v62 = vadd.f32 -1.0, %v564_v23  ;;  %v437_v22 = vmul.f32 16.0, %v405_v19 }
 0x16a   : > { %v2723_v16 = vadd.f32 -1.0, %v1298_v11  ;;  %v3131_v31 = vcvt.f32.s32 %v3130_v32  ;;  %v2983_v43 = vceil.f32 %v4068_v45  ;;  %v628_v44 = vsel %vm500_vm11, %v2597_v54, %v468_v5 }
 0x16b   : > { %v2755_v40 = vadd.f32 -1.0, %v1362_v53  ;;  %v533_v48 = vadd.f32 1.0, %v405_v19  ;;  %v2984_v8 = vfloor.f32 %v4068_v45  ;;  %vm660_vm13 = vcmp.lt.f32.partialorder %v628_v44, 0.0 }
 0x16c   : > { %v1495_v20 = vmul.f32 %v2723_v16, %v3758_v38  ;;  %v883_v10 = vcvt.s32.f32 %v3131_v31  ;;  %v756_v35 = vadd.f32 16.0, %v628_v44  ;;  %v2788_v21 = vadd.f32 -1.0, %v1427_v25  ;;  %v2041_v31 = vpop.f32.mrf.mxu3 }
 0x16d   : > { %v2306_v51 = vmul.f32 %v2755_v40, %v3801_v34  ;;  %v724_v41 = vsel %vm660_vm13, %v2629_v62, %v564_v23  ;;  %v469_v47 = vsub.f32 %v302_v42, %v437_v22  ;;  %v2985_v60 = vsel %vm2982_vm9, %v2983_v43, %v2984_v8 }
 0x16e   : > { %v2022_v3 = vadd.f32 %v2021_v27, %v1495_v20  ;;  %v915_v39 = vmul.f32 16.0, %v883_v10  ;;  %v788_v59 = vsel %vm660_vm13, %v756_v35, %v628_v44  ;;  %v1011_v29 = vadd.f32 1.0, %v883_v10 }
 0x16f   : > { %v820_v49 = vmul.f32 %v724_v41, %v3681_v2  ;;  %vm501_vm14 = vcmp.ge.f32.partialorder %v469_v47, 16.0  ;;  %v2598_v17 = vadd.f32 -16.0, %v469_v47  ;;  %v1428_v0 = vmul.f32 0.13333334, %v788_v59 }
 0x170   : > { %v2338_v36 = vadd.f32 %v2306_v51, %v2022_v3  ;;  %v947_v30 = vsub.f32 %v723_v52, %v915_v39  ;;  %v565_v55 = vsel %vm501_vm14, %v533_v48, %v405_v19  ;;  %v2986_v42 = vcvt.f32.s32 %v2985_v60 }
 0x171   : > { %vm3132_vm15 = vcmp.lt.s32.totalorder %v820_v49, 0  ;;  %v3133_v28 = vceil.f32 %v820_v49  ;;  %v3134_v14 = vfloor.f32 %v820_v49  ;;  %v629_v45 = vsel %vm501_vm14, %v2598_v17, %v469_v47 }
 0x172   : > { %v2406_v46 = vadd.f32 %v4073_v7, %v2338_v36  ;;  %vm979_vm0 = vcmp.ge.f32.partialorder %v947_v30, 16.0  ;;  %v2660_v12 = vadd.f32 -16.0, %v947_v30  ;;  %vm661_vm1 = vcmp.lt.f32.partialorder %v629_v45, 0.0 }
 0x173   : > { %v1043_v6 = vsel %vm979_vm0, %v1011_v29, %v883_v10  ;;  %v3135_v63 = vsel %vm3132_vm15, %v3133_v28, %v3134_v14  ;;  %v2630_v58 = vadd.f32 -1.0, %v565_v55  ;;  %v2375_v61 = vmul.f32 %v2788_v21, %v3760_v37 }
 0x174   : > { %2438 = vst [vmem:[%s3835_s19 + $0x90] sm:$0xff] %v2406_v46  ;;  %v1107_v56 = vsel %vm979_vm0, %v2660_v12, %v947_v30  ;;  %v2692_v5 = vadd.f32 -1.0, %v1043_v6  ;;  %v3136_v1 = vcvt.f32.s32 %v3135_v63  ;;  %v2789_v18 = vadd.f32 -1.0, %v1428_v0 }
 0x175   : > { %vm1139_vm2 = vcmp.lt.f32.partialorder %v1107_v56, 0.0  ;;  %v1235_v52 = vadd.f32 16.0, %v1107_v56  ;;  %v725_v7 = vsel %vm661_vm1, %v2630_v58, %v565_v55  ;;  %v406_v19 = vcvt.s32.f32 %v2986_v42 }
 0x176   : > { %v1203_v50 = vsel %vm1139_vm2, %v2692_v5, %v1043_v6  ;;  %v884_v9 = vcvt.s32.f32 %v3136_v1  ;;  %v821_v13 = vmul.f32 %v725_v7, %v3681_v2  ;;  %v4097_v24 = vadd.s32 2944, %v3667_v57 }
 0x177   : > { %v1267_v15 = vsel %vm1139_vm2, %v1235_v52, %v1107_v56  ;;  %v1299_v33 = vmul.f32 0.13333334, %v1203_v50  ;;  %v757_v53 = vadd.f32 16.0, %v629_v45  ;;  %v4100_v43 = vmul.f32 %v2789_v18, %v3760_v37  ;;  %v2061_v50 = vpop.f32.mrf.mxu0 }
 0x178   : > { %v1363_v11 = vmul.f32 0.13333334, %v1267_v15  ;;  %v916_v25 = vmul.f32 16.0, %v884_v9  ;;  %v1012_v23 = vadd.f32 1.0, %v884_v9  ;;  %vm3137_vm3 = vcmp.lt.s32.totalorder %v821_v13, 0 }
 0x179   : > { %v2724_v32 = vadd.f32 -1.0, %v1299_v33  ;;  %v3138_v54 = vceil.f32 %v821_v13  ;;  %v3139_v62 = vfloor.f32 %v821_v13  ;;  %v438_v40 = vmul.f32 16.0, %v406_v19 }
 0x17a   : > { %v2756_v16 = vadd.f32 -1.0, %v1363_v11  ;;  %v948_v22 = vsub.f32 %v724_v41, %v916_v25  ;;  %v534_v48 = vadd.f32 1.0, %v406_v19  ;;  %v304_v8 = vcvt.s32.f32 %v4097_v24 }
 0x17b   : > { %v1496_v27 = vmul.f32 %v2724_v32, %v3758_v38  ;;  %v3140_v44 = vsel %vm3137_vm3, %v3138_v54, %v3139_v62  ;;  %v789_v47 = vsel %vm661_vm1, %v757_v53, %v629_v45  ;;  %v470_v41 = vsub.f32 %v303_v4, %v438_v40 }
 0x17c   : > { %v2307_v20 = vmul.f32 %v2756_v16, %v3801_v34  ;;  %vm980_vm4 = vcmp.ge.f32.partialorder %v948_v22, 16.0  ;;  %v2661_v10 = vadd.f32 -16.0, %v948_v22  ;;  %v3141_v35 = vcvt.f32.s32 %v3140_v44 }
 0x17d   : > { %v2042_v51 = vadd.f32 %v2041_v31, %v1496_v27  ;;  %v1044_v21 = vsel %vm980_vm4, %v1012_v23, %v884_v9  ;;  %v343_v60 = vmul.f32 %v3681_v2, %v304_v8  ;;  %vm502_vm6 = vcmp.ge.f32.partialorder %v470_v41, 16.0 }
 0x17e   : > { %v1108_v3 = vsel %vm980_vm4, %v2661_v10, %v948_v22  ;;  %v2693_v39 = vadd.f32 -1.0, %v1044_v21  ;;  %v885_v59 = vcvt.s32.f32 %v3141_v35  ;;  %v566_v0 = vsel %vm502_vm6, %v534_v48, %v406_v19 }
 0x17f   : > { %v2339_v29 = vadd.f32 %v2307_v20, %v2042_v51  ;;  %vm1140_vm5 = vcmp.lt.f32.partialorder %v1108_v3, 0.0  ;;  %v1236_v49 = vadd.f32 16.0, %v1108_v3  ;;  %v2599_v4 = vadd.f32 -16.0, %v470_v41 }
 0x180   : > { %v1204_v17 = vsel %vm1140_vm5, %v2693_v39, %v1044_v21  ;;  %v917_v36 = vmul.f32 16.0, %v885_v59  ;;  %v1013_v30 = vadd.f32 1.0, %v885_v59  ;;  %v1429_v46 = vmul.f32 0.13333334, %v789_v47  ;;  %v2081_v39 = vpop.f32.mrf.mxu1 }
 0x181   : > { %v2407_v55 = vadd.f32 %v2375_v61, %v2339_v29  ;;  %v1268_v28 = vsel %vm1140_vm5, %v1236_v49, %v1108_v3  ;;  %v1300_v26 = vmul.f32 0.13333334, %v1204_v17  ;;  %v2631_v12 = vadd.f32 -1.0, %v566_v0 }
 0x182   : > { %v1364_v14 = vmul.f32 0.13333334, %v1268_v28  ;;  %v949_v42 = vsub.f32 %v725_v7, %v917_v36  ;;  %v630_v6 = vsel %vm502_vm6, %v2599_v4, %v470_v41  ;;  %v2988_v63 = vceil.f32 %v343_v60 }
 0x183   : > { %2439 = vst [vmem:[%s3835_s19 + $0x98] sm:$0xff] %v2407_v55  ;;  %v2725_v45 = vadd.f32 -1.0, %v1300_v26  ;;  %v2989_v56 = vfloor.f32 %v343_v60  ;;  %vm662_vm8 = vcmp.lt.f32.partialorder %v630_v6, 0.0  ;;  %v758_v18 = vadd.f32 16.0, %v630_v6 }
 0x184   : > { %v2757_v5 = vadd.f32 -1.0, %v1364_v14  ;;  %vm981_vm7 = vcmp.ge.f32.partialorder %v949_v42, 16.0  ;;  %v2662_v1 = vadd.f32 -16.0, %v949_v42  ;;  %v726_v61 = vsel %vm662_vm8, %v2631_v12, %v566_v0 }
 0x185   : > { %v1497_v58 = vmul.f32 %v2725_v45, %v3758_v38  ;;  %v1045_v52 = vsel %vm981_vm7, %v1013_v30, %v885_v59  ;;  %v822_v15 = vmul.f32 %v726_v61, %v3681_v2  ;;  %vm2987_vm10 = vcmp.lt.s32.totalorder %v343_v60, 0 }
 0x186   : > { %v2308_v9 = vmul.f32 %v2757_v5, %v3801_v34  ;;  %v1109_v7 = vsel %vm981_vm7, %v2662_v1, %v949_v42  ;;  %v2694_v19 = vadd.f32 -1.0, %v1045_v52  ;;  %v790_v62 = vsel %vm662_vm8, %v758_v18, %v630_v6 }
 0x187   : > { %v2062_v33 = vadd.f32 %v2061_v50, %v1497_v58  ;;  %vm1141_vm9 = vcmp.lt.f32.partialorder %v1109_v7, 0.0  ;;  %v1237_v13 = vadd.f32 16.0, %v1109_v7  ;;  %vm3142_vm11 = vcmp.lt.s32.totalorder %v822_v15, 0 }
 0x188   : > { %v1205_v11 = vsel %vm1141_vm9, %v2694_v19, %v1045_v52  ;;  %v3143_v25 = vceil.f32 %v822_v15  ;;  %v3144_v23 = vfloor.f32 %v822_v15  ;;  %v2990_v22 = vsel %vm2987_vm10, %v2988_v63, %v2989_v56 }
 0x189   : > { %v2340_v53 = vadd.f32 %v2308_v9, %v2062_v33  ;;  %v1269_v32 = vsel %vm1141_vm9, %v1237_v13, %v1109_v7  ;;  %v1301_v54 = vmul.f32 0.13333334, %v1205_v11  ;;  %v4118_v40 = vadd.s32 3072, %v3667_v57 }
 0x18a   : > { %v1365_v16 = vmul.f32 0.13333334, %v1269_v32  ;;  %v3145_v31 = vsel %vm3142_vm11, %v3143_v25, %v3144_v23  ;;  %v2790_v48 = vadd.f32 -1.0, %v1429_v46  ;;  %v2991_v35 = vcvt.f32.s32 %v2990_v22 }
 0x18b   : > { %v2408_v27 = vadd.f32 %v4100_v43, %v2340_v53  ;;  %v2726_v44 = vadd.f32 -1.0, %v1301_v54  ;;  %v3146_v20 = vcvt.f32.s32 %v3145_v31  ;;  %v305_v51 = vcvt.s32.f32 %v4118_v40 }
 0x18c   : > { %v2758_v10 = vadd.f32 -1.0, %v1365_v16  ;;  %v4123_v21 = vadd.s32 3200, %v3667_v57  ;;  %v1430_v3 = vmul.f32 0.13333334, %v790_v62  ;;  %v407_v60 = vcvt.s32.f32 %v2991_v35 }
 0x18d   : > { %2440 = vst [vmem:[%s3835_s19 + $0xa0] sm:$0xff] %v2408_v27  ;;  %v1498_v47 = vmul.f32 %v2726_v44, %v3758_v38  ;;  %v886_v41 = vcvt.s32.f32 %v3146_v20  ;;  %v344_v43 = vmul.f32 %v3681_v2, %v305_v51  ;;  %v2377_v17 = vmul.f32 %v2790_v48, %v3760_v37  ;;  %v2101_v27 = vpop.f32.mrf.mxu2 }
 0x18e   : > { %v2309_v59 = vmul.f32 %v2758_v10, %v3801_v34  ;;  %v306_v29 = vcvt.s32.f32 %v4123_v21  ;;  %v4134_v30 = vadd.s32 3328, %v3667_v57  ;;  %v439_v55 = vmul.f32 16.0, %v407_v60 }
 0x18f   : > { %v2082_v49 = vadd.f32 %v2081_v39, %v1498_v47  ;;  %v918_v36 = vmul.f32 16.0, %v886_v41  ;;  %v1014_v0 = vadd.f32 1.0, %v886_v41  ;;  %vm2992_vm12 = vcmp.lt.s32.totalorder %v344_v43, 0 }
 0x190   : > { %v2993_v28 = vceil.f32 %v344_v43  ;;  %v535_v14 = vadd.f32 1.0, %v407_v60  ;;  %v2994_v42 = vfloor.f32 %v344_v43  ;;  %v2791_v46 = vadd.f32 -1.0, %v1430_v3 }
 0x191   : > { %v2341_v26 = vadd.f32 %v2309_v59, %v2082_v49  ;;  %v950_v4 = vsub.f32 %v726_v61, %v918_v36  ;;  %v471_v12 = vsub.f32 %v304_v8, %v439_v55  ;;  %v345_v45 = vmul.f32 %v3681_v2, %v306_v29 }
 0x192   : > { %v2995_v56 = vsel %vm2992_vm12, %v2993_v28, %v2994_v42  ;;  %v307_v50 = vcvt.s32.f32 %v4134_v30  ;;  %v2378_v3 = vmul.f32 %v2791_v46, %v3760_v37  ;;  %v4155_v49 = vadd.s32 3456, %v3667_v57 }
 0x193   : > { %v2409_v6 = vadd.f32 %v2377_v17, %v2341_v26  ;;  %vm982_vm13 = vcmp.ge.f32.partialorder %v950_v4, 16.0  ;;  %v2663_v63 = vadd.f32 -16.0, %v950_v4  ;;  %vm503_vm14 = vcmp.ge.f32.partialorder %v471_v12, 16.0 }
 0x194   : > { %v1046_v5 = vsel %vm982_vm13, %v1014_v0, %v886_v41  ;;  %v2600_v1 = vadd.f32 -16.0, %v471_v12  ;;  %v2996_v58 = vcvt.f32.s32 %v2995_v56  ;;  %v567_v18 = vsel %vm503_vm14, %v535_v14, %v407_v60 }
 0x195   : > { %2441 = vst [vmem:[%s3835_s19 + $0xa8] sm:$0xff] %v2409_v6  ;;  %v1110_v52 = vsel %vm982_vm13, %v2663_v63, %v950_v4  ;;  %v2695_v61 = vadd.f32 -1.0, %v1046_v5  ;;  %v2632_v9 = vadd.f32 -1.0, %v567_v18  ;;  %v2998_v25 = vceil.f32 %v345_v45 }
 0x196   : > { %vm1142_vm15 = vcmp.lt.f32.partialorder %v1110_v52, 0.0  ;;  %v1238_v24 = vadd.f32 16.0, %v1110_v52  ;;  %v631_v8 = vsel %vm503_vm14, %v2600_v1, %v471_v12  ;;  %v408_v15 = vcvt.s32.f32 %v2996_v58 }
 0x197   : > { %v1206_v7 = vsel %vm1142_vm15, %v2695_v61, %v1046_v5  ;;  %vm663_vm0 = vcmp.lt.f32.partialorder %v631_v8, 0.0  ;;  %v759_v19 = vadd.f32 16.0, %v631_v8  ;;  %vm2997_vm1 = vcmp.lt.s32.totalorder %v345_v45, 0 }
 0x198   : > { %v1270_v33 = vsel %vm1142_vm15, %v1238_v24, %v1110_v52  ;;  %v1302_v13 = vmul.f32 0.13333334, %v1206_v7  ;;  %v727_v11 = vsel %vm663_vm0, %v2632_v9, %v567_v18  ;;  %v440_v32 = vmul.f32 16.0, %v408_v15 }
 0x199   : > { %v1366_v23 = vmul.f32 0.13333334, %v1270_v33  ;;  %v823_v53 = vmul.f32 %v727_v11, %v3681_v2  ;;  %v536_v62 = vadd.f32 1.0, %v408_v15  ;;  %v2999_v16 = vfloor.f32 %v345_v45 }
 0x19a   : > { %v2727_v54 = vadd.f32 -1.0, %v1302_v13  ;;  %v346_v31 = vmul.f32 %v3681_v2, %v307_v50  ;;  %v791_v10 = vsel %vm663_vm0, %v759_v19, %v631_v8  ;;  %v472_v35 = vsub.f32 %v305_v51, %v440_v32 }
 0x19b   : > { %v2759_v22 = vadd.f32 -1.0, %v1366_v23  ;;  %vm3147_vm2 = vcmp.lt.s32.totalorder %v823_v53, 0  ;;  %v3148_v44 = vceil.f32 %v823_v53  ;;  %v3149_v48 = vfloor.f32 %v823_v53 }
 0x19c   : > { %v1499_v20 = vmul.f32 %v2727_v54, %v3758_v38  ;;  %v3000_v47 = vsel %vm2997_vm1, %v2998_v25, %v2999_v16  ;;  %vm504_vm3 = vcmp.ge.f32.partialorder %v472_v35, 16.0  ;;  %v1431_v17 = vmul.f32 0.13333334, %v791_v10 }
 0x19d   : > { %v2310_v41 = vmul.f32 %v2759_v22, %v3801_v34  ;;  %v3150_v39 = vsel %vm3147_vm2, %v3148_v44, %v3149_v48  ;;  %v3001_v59 = vcvt.f32.s32 %v3000_v47  ;;  %v568_v36 = vsel %vm504_vm3, %v536_v62, %v408_v15 }
 0x19e   : > { %v2102_v60 = vadd.f32 %v2101_v27, %v1499_v20  ;;  %v3151_v43 = vcvt.f32.s32 %v3150_v39  ;;  %v2601_v0 = vadd.f32 -16.0, %v472_v35  ;;  %v2633_v51 = vadd.f32 -1.0, %v568_v36 }
 0x19f   : > { %v409_v55 = vcvt.s32.f32 %v3001_v59  ;;  %vm3002_vm4 = vcmp.lt.s32.totalorder %v346_v31, 0  ;;  %v3003_v14 = vceil.f32 %v346_v31  ;;  %v3004_v42 = vfloor.f32 %v346_v31 }
 0x1a0   : > { %v2342_v28 = vadd.f32 %v2310_v41, %v2102_v60  ;;  %v887_v40 = vcvt.s32.f32 %v3151_v43  ;;  %v632_v26 = vsel %vm504_vm3, %v2601_v0, %v472_v35  ;;  %v2792_v58 = vadd.f32 -1.0, %v1431_v17  ;;  %v2121_v60 = vpop.f32.mrf.mxu3 }
 0x1a1   : > { %v441_v4 = vmul.f32 16.0, %v409_v55  ;;  %vm664_vm5 = vcmp.lt.f32.partialorder %v632_v26, 0.0  ;;  %v537_v45 = vadd.f32 1.0, %v409_v55  ;;  %v760_v56 = vadd.f32 16.0, %v632_v26 }
 0x1a2   : > { %v2410_v46 = vadd.f32 %v2378_v3, %v2342_v28  ;;  %v919_v12 = vmul.f32 16.0, %v887_v40  ;;  %v1015_v6 = vadd.f32 1.0, %v887_v40  ;;  %v728_v63 = vsel %vm664_vm5, %v2633_v51, %v568_v36 }
 0x1a3   : > { %v473_v5 = vsub.f32 %v306_v29, %v441_v4  ;;  %v824_v52 = vmul.f32 %v728_v63, %v3681_v2  ;;  %v308_v61 = vcvt.s32.f32 %v4155_v49  ;;  %v792_v18 = vsel %vm664_vm5, %v760_v56, %v632_v26 }
 0x1a4   : > { %2442 = vst [vmem:[%s3835_s19 + $0xb0] sm:$0xff] %v2410_v46  ;;  %v951_v1 = vsub.f32 %v727_v11, %v919_v12  ;;  %v3005_v8 = vsel %vm3002_vm4, %v3003_v14, %v3004_v42  ;;  %v1432_v21 = vmul.f32 0.13333334, %v792_v18  ;;  %v2379_v27 = vmul.f32 %v2792_v58, %v3760_v37 }
 0x1a5   : > { %vm505_vm6 = vcmp.ge.f32.partialorder %v473_v5, 16.0  ;;  %v2602_v24 = vadd.f32 -16.0, %v473_v5  ;;  %vm3152_vm8 = vcmp.lt.s32.totalorder %v824_v52, 0  ;;  %v3153_v7 = vceil.f32 %v824_v52 }
 0x1a6   : > { %vm983_vm7 = vcmp.ge.f32.partialorder %v951_v1, 16.0  ;;  %v2664_v9 = vadd.f32 -16.0, %v951_v1  ;;  %v3154_v15 = vfloor.f32 %v824_v52  ;;  %v569_v29 = vsel %vm505_vm6, %v537_v45, %v409_v55 }
 0x1a7   : > { %v1047_v19 = vsel %vm983_vm7, %v1015_v6, %v887_v40  ;;  %v633_v11 = vsel %vm505_vm6, %v2602_v24, %v473_v5  ;;  %v2634_v25 = vadd.f32 -1.0, %v569_v29  ;;  %v3006_v32 = vcvt.f32.s32 %v3005_v8 }
 0x1a8   : > { %v1111_v33 = vsel %vm983_vm7, %v2664_v9, %v951_v1  ;;  %v2696_v13 = vadd.f32 -1.0, %v1047_v19  ;;  %v3155_v53 = vsel %vm3152_vm8, %v3153_v7, %v3154_v15  ;;  %v2793_v16 = vadd.f32 -1.0, %v1432_v21 }
 0x1a9   : > { %vm1143_vm9 = vcmp.lt.f32.partialorder %v1111_v33, 0.0  ;;  %v1239_v23 = vadd.f32 16.0, %v1111_v33  ;;  %v3156_v62 = vcvt.f32.s32 %v3155_v53  ;;  %vm665_vm10 = vcmp.lt.f32.partialorder %v633_v11, 0.0 }
 0x1aa   : > { %v1207_v54 = vsel %vm1143_vm9, %v2696_v13, %v1047_v19  ;;  %v729_v44 = vsel %vm665_vm10, %v2634_v25, %v569_v29  ;;  %v761_v10 = vadd.f32 16.0, %v633_v11  ;;  %v410_v41 = vcvt.s32.f32 %v3006_v32 }
 0x1ab   : > { %v1271_v31 = vsel %vm1143_vm9, %v1239_v23, %v1111_v33  ;;  %v1303_v22 = vmul.f32 0.13333334, %v1207_v54  ;;  %v888_v20 = vcvt.s32.f32 %v3156_v62  ;;  %v825_v35 = vmul.f32 %v729_v44, %v3681_v2 }
 0x1ac   : > { %v1367_v48 = vmul.f32 0.13333334, %v1271_v31  ;;  %v347_v3 = vmul.f32 %v3681_v2, %v308_v61  ;;  %v4170_v39 = vadd.s32 3584, %v3667_v57  ;;  %v4173_v17 = vmul.f32 %v2793_v16, %v3760_v37 }
 0x1ad   : > { %v2728_v47 = vadd.f32 -1.0, %v1303_v22  ;;  %v920_v43 = vmul.f32 16.0, %v888_v20  ;;  %vm3157_vm11 = vcmp.lt.s32.totalorder %v825_v35, 0  ;;  %v1016_v0 = vadd.f32 1.0, %v888_v20 }
 0x1ae   : > { %v2760_v59 = vadd.f32 -1.0, %v1367_v48  ;;  %v3158_v55 = vceil.f32 %v825_v35  ;;  %v3159_v28 = vfloor.f32 %v825_v35  ;;  %v793_v26 = vsel %vm665_vm10, %v761_v10, %v633_v11 }
 0x1af   : > { %v1500_v36 = vmul.f32 %v2728_v47, %v3758_v38  ;;  %v952_v51 = vsub.f32 %v728_v63, %v920_v43  ;;  %v442_v4 = vmul.f32 16.0, %v410_v41  ;;  %v538_v46 = vadd.f32 1.0, %v410_v41 }
 0x1b0   : > { %v2311_v40 = vmul.f32 %v2760_v59, %v3801_v34  ;;  %v3160_v42 = vsel %vm3157_vm11, %v3158_v55, %v3159_v28  ;;  %vm3007_vm12 = vcmp.lt.s32.totalorder %v347_v3, 0  ;;  %v3008_v1 = vceil.f32 %v347_v3 }
 0x1b1   : > { %v2122_v14 = vadd.f32 %v2121_v60, %v1500_v36  ;;  %vm984_vm13 = vcmp.ge.f32.partialorder %v952_v51, 16.0  ;;  %v2665_v12 = vadd.f32 -16.0, %v952_v51  ;;  %v3161_v45 = vcvt.f32.s32 %v3160_v42 }
 0x1b2   : > { %v474_v6 = vsub.f32 %v307_v50, %v442_v4  ;;  %v1048_v5 = vsel %vm984_vm13, %v1016_v0, %v888_v20  ;;  %v3009_v58 = vfloor.f32 %v347_v3  ;;  %v309_v23 = vcvt.s32.f32 %v4170_v39 }
 0x1b3   : > { %v2343_v56 = vadd.f32 %v2311_v40, %v2122_v14  ;;  %v1112_v52 = vsel %vm984_vm13, %v2665_v12, %v952_v51  ;;  %v2697_v63 = vadd.f32 -1.0, %v1048_v5  ;;  %v889_v18 = vcvt.s32.f32 %v3161_v45 }
 0x1b4   : > { %vm506_vm14 = vcmp.ge.f32.partialorder %v474_v6, 16.0  ;;  %vm1144_vm15 = vcmp.lt.f32.partialorder %v1112_v52, 0.0  ;;  %v1240_v8 = vadd.f32 16.0, %v1112_v52  ;;  %v2603_v21 = vadd.f32 -16.0, %v474_v6 }
 0x1b5   : > { %v2411_v24 = vadd.f32 %v2379_v27, %v2343_v56  ;;  %v570_v9 = vsel %vm506_vm14, %v538_v46, %v410_v41  ;;  %v1208_v7 = vsel %vm1144_vm15, %v2697_v63, %v1048_v5  ;;  %v921_v19 = vmul.f32 16.0, %v889_v18 }
 0x1b6   : > { %v1017_v15 = vadd.f32 1.0, %v889_v18  ;;  %v1272_v30 = vsel %vm1144_vm15, %v1240_v8, %v1112_v52  ;;  %v1304_v50 = vmul.f32 0.13333334, %v1208_v7  ;;  %v2635_v29 = vadd.f32 -1.0, %v570_v9 }
 0x1b7   : > { %2443 = vst [vmem:[%s3835_s19 + $0xb8] sm:$0xff] %v2411_v24  ;;  %v3010_v33 = vsel %vm3007_vm12, %v3008_v1, %v3009_v58  ;;  %v1368_v13 = vmul.f32 0.13333334, %v1272_v30  ;;  %v953_v11 = vsub.f32 %v729_v44, %v921_v19  ;;  %v634_v25 = vsel %vm506_vm14, %v2603_v21, %v474_v6  ;;  %v2141_v44 = vpop.f32.mrf.mxu0  ;;  %v2161_v24 = vpop.f32.mrf.mxu1 }
 0x1b8   : > { %v2729_v53 = vadd.f32 -1.0, %v1304_v50  ;;  %v1433_v32 = vmul.f32 0.13333334, %v793_v26  ;;  %vm666_vm0 = vcmp.lt.f32.partialorder %v634_v25, 0.0  ;;  %v3011_v54 = vcvt.f32.s32 %v3010_v33 }
 0x1b9   : > { %v2761_v62 = vadd.f32 -1.0, %v1368_v13  ;;  %vm985_vm1 = vcmp.ge.f32.partialorder %v953_v11, 16.0  ;;  %v2666_v16 = vadd.f32 -16.0, %v953_v11  ;;  %v730_v31 = vsel %vm666_vm0, %v2635_v29, %v570_v9 }
 0x1ba   : > { %v1501_v22 = vmul.f32 %v2729_v53, %v3758_v38  ;;  %v1049_v27 = vsel %vm985_vm1, %v1017_v15, %v889_v18  ;;  %v762_v48 = vadd.f32 16.0, %v634_v25  ;;  %v826_v20 = vmul.f32 %v730_v31, %v3681_v2 }
 0x1bb   : > { %v2312_v10 = vmul.f32 %v2761_v62, %v3801_v34  ;;  %v1113_v35 = vsel %vm985_vm1, %v2666_v16, %v953_v11  ;;  %v2698_v47 = vadd.f32 -1.0, %v1049_v27  ;;  %v348_v41 = vmul.f32 %v3681_v2, %v309_v23 }
 0x1bc   : > { %v2142_v3 = vadd.f32 %v2141_v44, %v1501_v22  ;;  %vm1145_vm2 = vcmp.lt.f32.partialorder %v1113_v35, 0.0  ;;  %v1241_v59 = vadd.f32 16.0, %v1113_v35  ;;  %vm3162_vm3 = vcmp.lt.s32.totalorder %v826_v20, 0 }
 0x1bd   : > { %v1209_v60 = vsel %vm1145_vm2, %v2698_v47, %v1049_v27  ;;  %v2794_v43 = vadd.f32 -1.0, %v1433_v32  ;;  %v3163_v36 = vceil.f32 %v826_v20  ;;  %v3164_v0 = vfloor.f32 %v826_v20 }
 0x1be   : > { %v2344_v55 = vadd.f32 %v2312_v10, %v2142_v3  ;;  %v1273_v28 = vsel %vm1145_vm2, %v1241_v59, %v1113_v35  ;;  %v1305_v40 = vmul.f32 0.13333334, %v1209_v60  ;;  %v411_v51 = vcvt.s32.f32 %v3011_v54 }
 0x1bf   : > { %v1369_v26 = vmul.f32 0.13333334, %v1273_v28  ;;  %v794_v4 = vsel %vm666_vm0, %v762_v48, %v634_v25  ;;  %v3165_v14 = vsel %vm3162_vm3, %v3163_v36, %v3164_v0  ;;  %vm3012_vm4 = vcmp.lt.s32.totalorder %v348_v41, 0 }
 0x1c0   : > { %v2412_v42 = vadd.f32 %v4173_v17, %v2344_v55  ;;  %v2730_v46 = vadd.f32 -1.0, %v1305_v40  ;;  %v3166_v12 = vcvt.f32.s32 %v3165_v14  ;;  %v443_v45 = vmul.f32 16.0, %v411_v51 }
 0x1c1   : > { %v2762_v6 = vadd.f32 -1.0, %v1369_v26  ;;  %v539_v56 = vadd.f32 1.0, %v411_v51  ;;  %v3013_v5 = vceil.f32 %v348_v41  ;;  %v3014_v1 = vfloor.f32 %v348_v41 }
 0x1c2   : > { %2444 = vst [vmem:[%s3835_s19 + $0xc0] sm:$0xff] %v2412_v42  ;;  %v1502_v58 = vmul.f32 %v2730_v46, %v3758_v38  ;;  %v890_v52 = vcvt.s32.f32 %v3166_v12  ;;  %v475_v63 = vsub.f32 %v308_v61, %v443_v45  ;;  %v4199_v18 = vadd.s32 3712, %v3667_v57  ;;  %v2181_v42 = vpop.f32.mrf.mxu2 }
 0x1c3   : > { %v2313_v17 = vmul.f32 %v2762_v6, %v3801_v34  ;;  %v2381_v8 = vmul.f32 %v2794_v43, %v3760_v37  ;;  %v1434_v9 = vmul.f32 0.13333334, %v794_v4  ;;  %v3015_v7 = vsel %vm3012_vm4, %v3013_v5, %v3014_v1 }
 0x1c4   : > { %v2162_v19 = vadd.f32 %v2161_v24, %v1502_v58  ;;  %v922_v15 = vmul.f32 16.0, %v890_v52  ;;  %v1018_v21 = vadd.f32 1.0, %v890_v52  ;;  %vm507_vm5 = vcmp.ge.f32.partialorder %v475_v63, 16.0 }
 0x1c5   : > { %v571_v30 = vsel %vm507_vm5, %v539_v56, %v411_v51  ;;  %v2604_v50 = vadd.f32 -16.0, %v475_v63  ;;  %v3016_v29 = vcvt.f32.s32 %v3015_v7  ;;  %v310_v49 = vcvt.s32.f32 %v4199_v18 }
 0x1c6   : > { %v2345_v61 = vadd.f32 %v2313_v17, %v2162_v19  ;;  %v954_v33 = vsub.f32 %v730_v31, %v922_v15  ;;  %v2636_v13 = vadd.f32 -1.0, %v571_v30  ;;  %v2795_v11 = vadd.f32 -1.0, %v1434_v9 }
 0x1c7   : > { %v635_v25 = vsel %vm507_vm5, %v2604_v50, %v475_v63  ;;  %v412_v53 = vcvt.s32.f32 %v3016_v29  ;;  %v4206_v32 = vadd.s32 3840, %v3667_v57  ;;  %v349_v48 = vmul.f32 %v3681_v2, %v310_v49 }
 0x1c8   : > { %v2413_v54 = vadd.f32 %v2381_v8, %v2345_v61  ;;  %vm986_vm6 = vcmp.ge.f32.partialorder %v954_v33, 16.0  ;;  %v2667_v62 = vadd.f32 -16.0, %v954_v33  ;;  %vm667_vm7 = vcmp.lt.f32.partialorder %v635_v25, 0.0 }
 0x1c9   : > { %v1050_v16 = vsel %vm986_vm6, %v1018_v21, %v890_v52  ;;  %v731_v22 = vsel %vm667_vm7, %v2636_v13, %v571_v30  ;;  %v444_v27 = vmul.f32 16.0, %v412_v53  ;;  %v540_v10 = vadd.f32 1.0, %v412_v53 }
 0x1ca   : > { %2445 = vst [vmem:[%s3835_s19 + $0xc8] sm:$0xff] %v2413_v54  ;;  %v1114_v31 = vsel %vm986_vm6, %v2667_v62, %v954_v33  ;;  %v2699_v20 = vadd.f32 -1.0, %v1050_v16  ;;  %v827_v44 = vmul.f32 %v731_v22, %v3681_v2  ;;  %v763_v47 = vadd.f32 16.0, %v635_v25 }
 0x1cb   : > { %vm1146_vm8 = vcmp.lt.f32.partialorder %v1114_v31, 0.0  ;;  %v1242_v35 = vadd.f32 16.0, %v1114_v31  ;;  %v476_v41 = vsub.f32 %v309_v23, %v444_v27  ;;  %v4217_v0 = vadd.s32 3968, %v3667_v57 }
 0x1cc   : > { %v1210_v3 = vsel %vm1146_vm8, %v2699_v20, %v1050_v16  ;;  %vm3167_vm9 = vcmp.lt.s32.totalorder %v827_v44, 0  ;;  %v3168_v59 = vceil.f32 %v827_v44  ;;  %v3169_v60 = vfloor.f32 %v827_v44 }
 0x1cd   : > { %v1274_v43 = vsel %vm1146_vm8, %v1242_v35, %v1114_v31  ;;  %v1306_v36 = vmul.f32 0.13333334, %v1210_v3  ;;  %vm508_vm10 = vcmp.ge.f32.partialorder %v476_v41, 16.0  ;;  %v2605_v51 = vadd.f32 -16.0, %v476_v41 }
 0x1ce   : > { %v1370_v55 = vmul.f32 0.13333334, %v1274_v43  ;;  %v3170_v28 = vsel %vm3167_vm9, %v3168_v59, %v3169_v60  ;;  %v572_v40 = vsel %vm508_vm10, %v540_v10, %v412_v53  ;;  %v795_v4 = vsel %vm667_vm7, %v763_v47, %v635_v25 }
 0x1cf   : > { %v2731_v26 = vadd.f32 -1.0, %v1306_v36  ;;  %v3171_v14 = vcvt.f32.s32 %v3170_v28  ;;  %v2637_v39 = vadd.f32 -1.0, %v572_v40  ;;  %v636_v46 = vsel %vm508_vm10, %v2605_v51, %v476_v41 }
 0x1d0   : > { %v2763_v23 = vadd.f32 -1.0, %v1370_v55  ;;  %v3018_v12 = vceil.f32 %v349_v48  ;;  %v311_v45 = vcvt.s32.f32 %v4206_v32  ;;  %vm668_vm11 = vcmp.lt.f32.partialorder %v636_v46, 0.0 }
 0x1d1   : > { %v1503_v6 = vmul.f32 %v2731_v26, %v3758_v38  ;;  %v891_v56 = vcvt.s32.f32 %v3171_v14  ;;  %vm3017_vm12 = vcmp.lt.s32.totalorder %v349_v48, 0  ;;  %v1435_v5 = vmul.f32 0.13333334, %v795_v4  ;;  %v2201_v14 = vpop.f32.mrf.mxu3 }
 0x1d2   : > { %v2314_v57 = vmul.f32 %v2763_v23, %v3801_v34  ;;  %v732_v1 = vsel %vm668_vm11, %v2637_v39, %v572_v40  ;;  %v3019_v58 = vfloor.f32 %v349_v48  ;;  %v2382_v63 = vmul.f32 %v2795_v11, %v3760_v37 }
 0x1d3   : > { %v2182_v52 = vadd.f32 %v2181_v42, %v1503_v6  ;;  %v923_v24 = vmul.f32 16.0, %v891_v56  ;;  %v828_v17 = vmul.f32 %v732_v1, %v3681_v2  ;;  %v1019_v8 = vadd.f32 1.0, %v891_v56 }
 0x1d4   : > { %v3020_v9 = vsel %vm3017_vm12, %v3018_v12, %v3019_v58  ;;  %v350_v7 = vmul.f32 %v3681_v2, %v311_v45  ;;  %v2796_v30 = vadd.f32 -1.0, %v1435_v5  ;;  %v312_v61 = vcvt.s32.f32 %v4217_v0 }
 0x1d5   : > { %v2346_v19 = vadd.f32 %v2314_v57, %v2182_v52  ;;  %v955_v15 = vsub.f32 %v731_v22, %v923_v24  ;;  %vm3172_vm13 = vcmp.lt.s32.totalorder %v828_v17, 0  ;;  %v3173_v21 = vceil.f32 %v828_v17 }
 0x1d6   : > { %v3174_v50 = vfloor.f32 %v828_v17  ;;  %v3021_v29 = vcvt.f32.s32 %v3020_v9  ;;  %v3023_v11 = vceil.f32 %v350_v7  ;;  %vm3022_vm15 = vcmp.lt.s32.totalorder %v350_v7, 0 }
 0x1d7   : > { %v2414_v33 = vadd.f32 %v2382_v63, %v2346_v19  ;;  %vm987_vm14 = vcmp.ge.f32.partialorder %v955_v15, 16.0  ;;  %v2668_v13 = vadd.f32 -16.0, %v955_v15  ;;  %v3024_v22 = vfloor.f32 %v350_v7 }
 0x1d8   : > { %v1051_v25 = vsel %vm987_vm14, %v1019_v8, %v891_v56  ;;  %v3175_v53 = vsel %vm3172_vm13, %v3173_v21, %v3174_v50  ;;  %v413_v54 = vcvt.s32.f32 %v3021_v29  ;;  %v764_v31 = vadd.f32 16.0, %v636_v46 }
 0x1d9   : > { %2446 = vst [vmem:[%s3835_s19 + $0xd0] sm:$0xff] %v2414_v33  ;;  %v1115_v62 = vsel %vm987_vm14, %v2668_v13, %v955_v15  ;;  %v2700_v16 = vadd.f32 -1.0, %v1051_v25  ;;  %v3176_v27 = vcvt.f32.s32 %v3175_v53  ;;  %v3025_v47 = vsel %vm3022_vm15, %v3023_v11, %v3024_v22 }
 0x1da   : > { %vm1147_vm0 = vcmp.lt.f32.partialorder %v1115_v62, 0.0  ;;  %v1243_v48 = vadd.f32 16.0, %v1115_v62  ;;  %v445_v20 = vmul.f32 16.0, %v413_v54  ;;  %v541_v35 = vadd.f32 1.0, %v413_v54 }
 0x1db   : > { %v1211_v44 = vsel %vm1147_vm0, %v2700_v16, %v1051_v25  ;;  %v892_v10 = vcvt.s32.f32 %v3176_v27  ;;  %v3026_v60 = vcvt.f32.s32 %v3025_v47  ;;  %v2383_v36 = vmul.f32 %v2796_v30, %v3760_v37  ;;  %v2221_v16 = vpop.f32.mrf.mxu0 }
 0x1dc   : > { %v1275_v41 = vsel %vm1147_vm0, %v1243_v48, %v1115_v62  ;;  %v1307_v3 = vmul.f32 0.13333334, %v1211_v44  ;;  %v477_v59 = vsub.f32 %v310_v49, %v445_v20  ;;  %v796_v39 = vsel %vm668_vm11, %v764_v31, %v636_v46 }
 0x1dd   : > { %v1371_v43 = vmul.f32 0.13333334, %v1275_v41  ;;  %v924_v55 = vmul.f32 16.0, %v892_v10  ;;  %v1020_v28 = vadd.f32 1.0, %v892_v10  ;;  %v414_v26 = vcvt.s32.f32 %v3026_v60 }
 0x1de   : > { %v2732_v40 = vadd.f32 -1.0, %v1307_v3  ;;  %vm509_vm1 = vcmp.ge.f32.partialorder %v477_v59, 16.0  ;;  %v2606_v51 = vadd.f32 -16.0, %v477_v59  ;;  %v1436_v52 = vmul.f32 0.13333334, %v796_v39 }
 0x1df   : > { %v2764_v4 = vadd.f32 -1.0, %v1371_v43  ;;  %v956_v23 = vsub.f32 %v732_v1, %v924_v55  ;;  %v573_v42 = vsel %vm509_vm1, %v541_v35, %v413_v54  ;;  %v446_v6 = vmul.f32 16.0, %v414_v26 }
 0x1e0   : > { %v1504_v12 = vmul.f32 %v2732_v40, %v3758_v38  ;;  %v637_v18 = vsel %vm509_vm1, %v2606_v51, %v477_v59  ;;  %v2638_v49 = vadd.f32 -1.0, %v573_v42  ;;  %v351_v7 = vmul.f32 %v3681_v2, %v312_v61 }
 0x1e1   : > { %v2315_v56 = vmul.f32 %v2764_v4, %v3801_v34  ;;  %vm988_vm2 = vcmp.ge.f32.partialorder %v956_v23, 16.0  ;;  %v2669_v57 = vadd.f32 -16.0, %v956_v23  ;;  %vm669_vm3 = vcmp.lt.f32.partialorder %v637_v18, 0.0 }
 0x1e2   : > { %v2202_v5 = vadd.f32 %v2201_v14, %v1504_v12  ;;  %v1052_v58 = vsel %vm988_vm2, %v1020_v28, %v892_v10  ;;  %v733_v63 = vsel %vm669_vm3, %v2638_v49, %v573_v42  ;;  %v478_v1 = vsub.f32 %v311_v45, %v446_v6 }
 0x1e3   : > { %v1116_v24 = vsel %vm988_vm2, %v2669_v57, %v956_v23  ;;  %v2701_v17 = vadd.f32 -1.0, %v1052_v58  ;;  %v829_v46 = vmul.f32 %v733_v63, %v3681_v2  ;;  %v2797_v33 = vadd.f32 -1.0, %v1436_v52 }
 0x1e4   : > { %v2347_v8 = vadd.f32 %v2315_v56, %v2202_v5  ;;  %vm1148_vm4 = vcmp.lt.f32.partialorder %v1116_v24, 0.0  ;;  %v1244_v9 = vadd.f32 16.0, %v1116_v24  ;;  %vm510_vm6 = vcmp.ge.f32.partialorder %v478_v1, 16.0 }
 0x1e5   : > { %v1212_v19 = vsel %vm1148_vm4, %v2701_v17, %v1052_v58  ;;  %vm3177_vm5 = vcmp.lt.s32.totalorder %v829_v46, 0  ;;  %v3178_v15 = vceil.f32 %v829_v46  ;;  %v3179_v21 = vfloor.f32 %v829_v46 }
 0x1e6   : > { %v2415_v30 = vadd.f32 %v2383_v36, %v2347_v8  ;;  %v1276_v50 = vsel %vm1148_vm4, %v1244_v9, %v1116_v24  ;;  %v1308_v29 = vmul.f32 0.13333334, %v1212_v19  ;;  %v542_v32 = vadd.f32 1.0, %v414_v26 }
 0x1e7   : > { %v1372_v13 = vmul.f32 0.13333334, %v1276_v50  ;;  %v3180_v11 = vsel %vm3177_vm5, %v3178_v15, %v3179_v21  ;;  %v2607_v53 = vadd.f32 -16.0, %v478_v1  ;;  %v3028_v54 = vceil.f32 %v351_v7 }
 0x1e8   : > { %2447 = vst [vmem:[%s3835_s19 + $0xd8] sm:$0xff] %v2415_v30  ;;  %v2733_v45 = vadd.f32 -1.0, %v1308_v29  ;;  %v3181_v25 = vcvt.f32.s32 %v3180_v11  ;;  %v574_v27 = vsel %vm510_vm6, %v542_v32, %v414_v26  ;;  %vm3027_vm7 = vcmp.lt.s32.totalorder %v351_v7, 0  ;;  %v2241_v30 = vpop.f32.mrf.mxu1 }
 0x1e9   : > { %v2765_v62 = vadd.f32 -1.0, %v1372_v13  ;;  %v3029_v22 = vfloor.f32 %v351_v7  ;;  %v638_v20 = vsel %vm510_vm6, %v2607_v53, %v478_v1  ;;  %v765_v10 = vadd.f32 16.0, %v637_v18 }
 0x1ea   : > { %v1505_v48 = vmul.f32 %v2733_v45, %v3758_v38  ;;  %v893_v31 = vcvt.s32.f32 %v3181_v25  ;;  %vm670_vm8 = vcmp.lt.f32.partialorder %v638_v20, 0.0  ;;  %v2639_v35 = vadd.f32 -1.0, %v574_v27 }
 0x1eb   : > { %v2316_v44 = vmul.f32 %v2765_v62, %v3801_v34  ;;  %v2384_v41 = vmul.f32 %v2797_v33, %v3760_v37  ;;  %v3030_v59 = vsel %vm3027_vm7, %v3028_v54, %v3029_v22  ;;  %v797_v51 = vsel %vm669_vm3, %v765_v10, %v637_v18 }
 0x1ec   : > { %v2222_v47 = vadd.f32 %v2221_v16, %v1505_v48  ;;  %v925_v3 = vmul.f32 16.0, %v893_v31  ;;  %v1021_v60 = vadd.f32 1.0, %v893_v31  ;;  %v734_v43 = vsel %vm670_vm8, %v2639_v35, %v574_v27 }
 0x1ed   : > { %v3031_v36 = vcvt.f32.s32 %v3030_v59  ;;  %v830_v40 = vmul.f32 %v734_v43, %v3681_v2  ;;  %v1437_v6 = vmul.f32 0.13333334, %v797_v51  ;;  %v766_v46 = vadd.f32 16.0, %v638_v20 }
 0x1ee   : > { %v2348_v55 = vadd.f32 %v2316_v44, %v2222_v47  ;;  %v957_v28 = vsub.f32 %v733_v63, %v925_v3 }
 0x1ef   : > { %v415_v26 = vcvt.s32.f32 %v3031_v36  ;;  %vm3182_vm10 = vcmp.lt.s32.totalorder %v830_v40, 0  ;;  %v3183_v23 = vceil.f32 %v830_v40  ;;  %v3184_v42 = vfloor.f32 %v830_v40 }
 0x1f0   : > { %v2416_v4 = vadd.f32 %v2384_v41, %v2348_v55  ;;  %vm989_vm9 = vcmp.ge.f32.partialorder %v957_v28, 16.0  ;;  %v2670_v14 = vadd.f32 -16.0, %v957_v28  ;;  %v2798_v19 = vadd.f32 -1.0, %v1437_v6 }
 0x1f1   : > { %v1053_v39 = vsel %vm989_vm9, %v1021_v60, %v893_v31  ;;  %v447_v56 = vmul.f32 16.0, %v415_v26  ;;  %v3185_v5 = vsel %vm3182_vm10, %v3183_v23, %v3184_v42  ;;  %v543_v58 = vadd.f32 1.0, %v415_v26 }
 0x1f2   : > { %2448 = vst [vmem:[%s3835_s19 + $0xe0] sm:$0xff] %v2416_v4  ;;  %v1117_v12 = vsel %vm989_vm9, %v2670_v14, %v957_v28  ;;  %v2702_v49 = vadd.f32 -1.0, %v1053_v39  ;;  %v3186_v63 = vcvt.f32.s32 %v3185_v5  ;;  %v798_v11 = vsel %vm670_vm8, %v766_v46, %v638_v20  ;;  %v2261_v28 = vpop.f32.mrf.mxu2 }
 0x1f3   : > { %vm1149_vm11 = vcmp.lt.f32.partialorder %v1117_v12, 0.0  ;;  %v1245_v57 = vadd.f32 16.0, %v1117_v12  ;;  %v479_v18 = vsub.f32 %v312_v61, %v447_v56  ;;  %v2385_v25 = vmul.f32 %v2798_v19, %v3760_v37  ;;  %v2281_v19 = vpop.f32.mrf.mxu3 }
 0x1f4   : > { %v1213_v52 = vsel %vm1149_vm11, %v2702_v49, %v1053_v39  ;;  %v894_v8 = vcvt.s32.f32 %v3186_v63  ;;  %v1438_v22 = vmul.f32 0.13333334, %v798_v11 }
 0x1f5   : > { %v1277_v24 = vsel %vm1149_vm11, %v1245_v57, %v1117_v12  ;;  %v1309_v17 = vmul.f32 0.13333334, %v1213_v52  ;;  %vm511_vm12 = vcmp.ge.f32.partialorder %v479_v18, 16.0  ;;  %v2608_v9 = vadd.f32 -16.0, %v479_v18 }
 0x1f6   : > { %v1373_v1 = vmul.f32 0.13333334, %v1277_v24  ;;  %v575_v15 = vsel %vm511_vm12, %v543_v58, %v415_v26  ;;  %v926_v50 = vmul.f32 16.0, %v894_v8  ;;  %v1022_v13 = vadd.f32 1.0, %v894_v8 }
 0x1f7   : > { %v2734_v7 = vadd.f32 -1.0, %v1309_v17  ;;  %v639_v29 = vsel %vm511_vm12, %v2608_v9, %v479_v18  ;;  %v2640_v0 = vadd.f32 -1.0, %v575_v15 }
 0x1f8   : > { %v2766_v21 = vadd.f32 -1.0, %v1373_v1  ;;  %vm671_vm13 = vcmp.lt.f32.partialorder %v639_v29, 0.0  ;;  %v958_v32 = vsub.f32 %v734_v43, %v926_v50  ;;  %v767_v4 = vadd.f32 16.0, %v639_v29 }
 0x1f9   : > { %v1506_v33 = vmul.f32 %v2734_v7, %v3758_v38  ;;  %v735_v53 = vsel %vm671_vm13, %v2640_v0, %v575_v15 }
 0x1fa   : > { %v2317_v61 = vmul.f32 %v2766_v21, %v3801_v34  ;;  %vm990_vm14 = vcmp.ge.f32.partialorder %v958_v32, 16.0  ;;  %v2671_v54 = vadd.f32 -16.0, %v958_v32  ;;  %v831_v62 = vmul.f32 %v735_v53, %v3681_v2 }
 0x1fb   : > { %v2242_v45 = vadd.f32 %v2241_v30, %v1506_v33  ;;  %v1054_v27 = vsel %vm990_vm14, %v1022_v13, %v894_v8  ;;  %v2799_v2 = vadd.f32 -1.0, %v1438_v22  ;;  %v799_v6 = vsel %vm671_vm13, %v767_v4, %v639_v29 }
 0x1fc   : > { %v1118_v48 = vsel %vm990_vm14, %v2671_v54, %v958_v32  ;;  %v2703_v31 = vadd.f32 -1.0, %v1054_v27  ;;  %vm3187_vm15 = vcmp.lt.s32.totalorder %v831_v62, 0  ;;  %v3188_v44 = vceil.f32 %v831_v62 }
 0x1fd   : > { %v2349_v16 = vadd.f32 %v2317_v61, %v2242_v45  ;;  %vm1150_vm0 = vcmp.lt.f32.partialorder %v1118_v48, 0.0  ;;  %v1246_v20 = vadd.f32 16.0, %v1118_v48  ;;  %v3189_v35 = vfloor.f32 %v831_v62 }
 0x1fe   : > { %v1214_v47 = vsel %vm1150_vm0, %v2703_v31, %v1054_v27  ;;  %v2386_v23 = vmul.f32 %v2799_v2, %v3760_v37  ;;  %v1439_v18 = vmul.f32 0.13333334, %v799_v6 }
 0x1ff   : > { %v2417_v10 = vadd.f32 %v2385_v25, %v2349_v16  ;;  %v1278_v41 = vsel %vm1150_vm0, %v1246_v20, %v1118_v48  ;;  %v1310_v3 = vmul.f32 0.13333334, %v1214_v47  ;;  %v3190_v59 = vsel %vm3187_vm15, %v3188_v44, %v3189_v35 }
 0x200   : > { %v1374_v60 = vmul.f32 0.13333334, %v1278_v41  ;;  %v3191_v43 = vcvt.f32.s32 %v3190_v59  ;;  %v2800_v9 = vadd.f32 -1.0, %v1439_v18 }
 0x201   : > { %2449 = vst [vmem:[%s3835_s19 + $0xe8] sm:$0xff] %v2417_v10  ;;  %v2735_v36 = vadd.f32 -1.0, %v1310_v3 }
 0x202   : > { %v2767_v55 = vadd.f32 -1.0, %v1374_v60  ;;  %v895_v40 = vcvt.s32.f32 %v3191_v43  ;;  %v2387_v50 = vmul.f32 %v2800_v9, %v3760_v37 }
 0x203   : > { %v1507_v51 = vmul.f32 %v2735_v36, %v3758_v38 }
 0x204   : > { %v2318_v26 = vmul.f32 %v2767_v55, %v3801_v34  ;;  %v927_v14 = vmul.f32 16.0, %v895_v40  ;;  %v1023_v42 = vadd.f32 1.0, %v895_v40 }
 0x205   : > { %v2262_v39 = vadd.f32 %v2261_v28, %v1507_v51 }
 0x206   : > { %v959_v12 = vsub.f32 %v735_v53, %v927_v14 }
 0x207   : > { %v2350_v49 = vadd.f32 %v2318_v26, %v2262_v39 }
 0x208   : > { %vm991_vm1 = vcmp.ge.f32.partialorder %v959_v12, 16.0  ;;  %v2672_v56 = vadd.f32 -16.0, %v959_v12 }
 0x209   : > { %v2418_v57 = vadd.f32 %v2386_v23, %v2350_v49  ;;  %v1055_v5 = vsel %vm991_vm1, %v1023_v42, %v895_v40 }
 0x20a   : > { %v1119_v58 = vsel %vm991_vm1, %v2672_v56, %v959_v12  ;;  %v2704_v52 = vadd.f32 -1.0, %v1055_v5 }
 0x20b   : > { %2450 = vst [vmem:[%s3835_s19 + $0xf0] sm:$0xff] %v2418_v57  ;;  %vm1151_vm2 = vcmp.lt.f32.partialorder %v1119_v58, 0.0  ;;  %v1247_v63 = vadd.f32 16.0, %v1119_v58 }
 0x20c   : > { %v1215_v24 = vsel %vm1151_vm2, %v2704_v52, %v1055_v5 }
 0x20d   : > { %v1279_v17 = vsel %vm1151_vm2, %v1247_v63, %v1119_v58  ;;  %v1311_v46 = vmul.f32 0.13333334, %v1215_v24 }
 0x20e   : > { %v1375_v1 = vmul.f32 0.13333334, %v1279_v17 }
 0x20f   : > { %v2736_v8 = vadd.f32 -1.0, %v1311_v46 }
 0x210   : > { %v2768_v7 = vadd.f32 -1.0, %v1375_v1 }
 0x211   : > { %v1508_v15 = vmul.f32 %v2736_v8, %v3758_v38 }
 0x212   : > { %v2319_v21 = vmul.f32 %v2768_v7, %v3801_v34 }
 0x213   : > { %v2282_v30 = vadd.f32 %v2281_v19, %v1508_v15 }
 0x215   : > { %v2351_v29 = vadd.f32 %v2319_v21, %v2282_v30 }
 0x217   : > { %v2419_v33 = vadd.f32 %v2387_v50, %v2351_v29 }
 0x219   : > { %2451 = vst [vmem:[%s3835_s19 + $0xf8] sm:$0xff] %v2419_v33 }
 0x21a   : > { %3362 = shalt.err (!%p3359_p0)
}
 0x21b   : > { %3198 = dma.vmem_to_hbm [thread:$0]  (%p3522_p5), %s2469_s7, 4096, %s2471_s12, %s2453_s8  }
 0x21c PF: > { %s2482_s25 = sand.u32 1, %s3401_s9   ;;  %p3209_p3 = pnand %p2569_p9, %p3492_p6 }
 0x21d   : > { %s2483_s28 = scalar_lea.sflag [#allocation4], %s2482_s25 }
 0x21e   : > { %p3210_p7 = pneg %p3209_p3 }
 0x220   : > { %3396 = dma.done.wait (%p3210_p7), %s2483_s28, 4096  }
 0x221   : > { %3398 = vsyncadd (%p3210_p7), %s2483_s28, 4294963200  ;;  %s19_s14 = sadd.s32 1, %s3421_s14   ;;  %s4319_s9 = smov %s3405_s10 }
 0x222   : > { %p16_p10 = scmp.ge.s32.totalorder %s19_s14, 4   ;;  %s4320_s10 = smov %s3409_s11 }
 0x223   : > { %s4321_s11 = smov %s3531_s6  ;;  %s4322_s12 = smov %s3417_s13 }
 0x224   : > { %s4323_s13 = smov %s4325_s27  ;;  %18 = sbr.rel (!%p16_p10) target bundleno = 7 (0x7), region = 80 }
 0x229   :  { %2489 = vsyncpa [#allocation3], 1 }
 0x22a   :  { %2491 = vsyncpa [#allocation3 + $0x1], 1 }
 0x22b   :  { %2492 = vsyncpa [#allocation6], 1 }
 0x22c   :  { %2493 = vsyncpa [#allocation4], 1 }
 0x22d   :  { %2495 = vsyncpa [#allocation4 + $0x1], 1 }

</bundles_post_ra>
